<compile_context>
chip_gen: v7x
topology: tpu7x:2x2x1
jax: 0.10.0
libtpu: 0.0.40
codegen_flags: <defaults>
</compile_context>

<pallas_src>
import math
from functools import partial

import jax
import jax.numpy as jnp
from jax import lax
from jax.experimental import pallas as pl
from jax.experimental.pallas import tpu as pltpu

IN_DIM = 200   # hard-coded in the PyTorch module
KER = 9        # self.ker
EPS = 1e-5     # BatchNorm eps


# ---------- kernel 1: fused prologue (bn0 + e_W matmul + grouped conv + bn1 + fc + bn + tanh) ----------
def _prologue_kernel(x_ref, k_ref, ew_ref, wfc_ref, h_ref, xr_scratch, *,
                     B, in_ch, out_ch, in_dim, L, T):
    bn_s = 1.0 / math.sqrt(1.0 + EPS)          # eval-mode BN folded (fresh running stats)

    # bn0 + input_dropout(identity) + x @ e_W
    x0 = x_ref[...] * bn_s                                              # (B, in_dim)
    x1 = jnp.dot(x0, ew_ref[...], preferred_element_type=jnp.float32)   # (B, out_dim)

    # lane-safe "reshape" (B, in_ch*L) -> (B, in_ch, L) through a VMEM scratch
    # (matches PyTorch x.reshape(1, B*in_ch, L) with groups=B)
    for ic in range(in_ch):
        xr_scratch[:, ic, :] = x1[:, ic * L:(ic + 1) * L]
    xr = xr_scratch[...]                                                # (B, in_ch, L)

    kb = k_ref[...]                                                     # (B, out_ch, in_ch, KER)

    # grouped conv1d as VPU multiply-accumulates (total FLOPs are tiny),
    # fused with bn1 and the fc matmul; the fc weight is pre-reshaped to
    # (out_ch, T, in_dim) so no flatten/reshape of the conv output is needed.
    shifted = [xr[:, :, j:j + T] for j in range(KER)]                   # each (B, in_ch, T)
    h_pre = jnp.zeros((B, in_dim), jnp.float32)
    for oc in range(out_ch):
        tmp = jnp.zeros((B, in_ch, T), jnp.float32)
        for j in range(KER):
            tmp = tmp + shifted[j] * kb[:, oc, :, j:j + 1]
        y_oc = jnp.sum(tmp, axis=1) * bn_s                              # (B, T), bn1 folded
        h_pre = h_pre + jnp.dot(y_oc, wfc_ref[oc],
                                preferred_element_type=jnp.float32)     # (B, in_dim)

    # out_layer: Linear (done above) -> BatchNorm -> Tanh -> Dropout(identity)
    h = jnp.tanh(h_pre * bn_s)
    h_ref[...] = h.astype(h_ref.dtype)                                  # bf16 for the scoring matmul


# ---------- kernel 2: tiled entity scoring  sigmoid(h @ E_tile.T) ----------
def _score_kernel(h_ref, e_ref, pred_ref):
    # contract on in_dim (no explicit transpose); bf16 inputs, f32 accumulation
    logits = lax.dot_general(h_ref[...], e_ref[...],
                             (((1,), (1,)), ((), ())),
                             preferred_element_type=jnp.float32)        # (B, ent_tile)
    p = pl.reciprocal(1.0 + jnp.exp(-logits), approx=True)              # EUP reciprocal
    pred_ref[...] = jnp.minimum(p, 1.0)                                 # guard approx overshoot


def helper_forward(e1_idx, r_idx, params, *, ent_tile=2048):
    E, R, e_W = params["E"], params["R"], params["e_W"]
    in_ch, out_ch = params["in_ch"], params["out_ch"]
    num_ents, in_dim = E.shape
    out_dim = e_W.shape[1]
    L = out_dim // in_ch
    T = (L - KER) // 1 + 1                   # after_conv_len (stride = 1)
    B = e1_idx.shape[0]

    # hoisted preprocessing (fall back if not provided in params)
    E_bf = params.get("E_bf")
    if E_bf is None:
        E_bf = E.astype(jnp.bfloat16)
    W_fc_r = params.get("W_fc_r")
    if W_fc_r is None:
        W_fc_r = params["W_lin"].T.reshape(out_ch, T, in_dim)

    # glue: embedding gathers stay in plain JAX
    x = E[e1_idx]                                   # (B, in_dim) f32
    kb = R[r_idx]                                   # (B, out_ch, in_ch, KER) f32

    # 1) fused prologue -> h (B, in_dim) bf16
    h = pl.pallas_call(
        partial(_prologue_kernel, B=B, in_ch=in_ch, out_ch=out_ch,
                in_dim=in_dim, L=L, T=T),
        out_shape=jax.ShapeDtypeStruct((B, in_dim), jnp.bfloat16),
        grid=(1,),
        in_specs=[
            pl.BlockSpec((B, in_dim), lambda i: (0, 0)),
            pl.BlockSpec((B, out_ch, in_ch, KER), lambda i: (0, 0, 0, 0)),
            pl.BlockSpec((in_dim, out_dim), lambda i: (0, 0)),
            pl.BlockSpec((out_ch, T, in_dim), lambda i: (0, 0, 0)),
        ],
        out_specs=pl.BlockSpec((B, in_dim), lambda i: (0, 0)),
        scratch_shapes=[pltpu.VMEM((B, in_ch, L), jnp.float32)],
        compiler_params=pltpu.CompilerParams(dimension_semantics=("arbitrary",)),
    )(x, kb, e_W, W_fc_r)

    # 2) entity scoring: large lane-dense tiles, parallel grid, bf16 E stream
    ent_tile = max(128, min(int(ent_tile), pl.cdiv(num_ents, 128) * 128))
    grid_n = pl.cdiv(num_ents, ent_tile)            # edge blocks handled by Pallas masking
    pred = pl.pallas_call(
        _score_kernel,
        out_shape=jax.ShapeDtypeStruct((B, num_ents), jnp.float32),
        grid=(grid_n,),
        in_specs=[
            pl.BlockSpec((B, in_dim), lambda i: (0, 0)),
            pl.BlockSpec((ent_tile, in_dim), lambda i: (i, 0)),
        ],
        out_specs=pl.BlockSpec((B, ent_tile), lambda i: (0, i)),
        compiler_params=pltpu.CompilerParams(dimension_semantics=("parallel",)),
    )(h, E_bf)

    return pred


def xavier_normal(key, shape):
    rf = math.prod(shape[2:]) if len(shape) > 2 else 1
    fan_in, fan_out = shape[1] * rf, shape[0] * rf
    std = math.sqrt(2.0 / (fan_in + fan_out))
    return std * jax.random.normal(key, shape, dtype=jnp.float32)


if __name__ == "__main__":
    # analogue of the PyTorch `params` namespace
    in_ch, out_ch, k_factor = 10, 4, 1
    num_ents, num_rels = 256, 5
    out_dim = k_factor * IN_DIM
    L = out_dim // in_ch                     # 20
    T = (L - KER) // 1 + 1                   # 12
    fc_length = out_ch * T                   # 48

    key = jax.random.PRNGKey(0)
    kE, kR, kW, kL = jax.random.split(key, 4)
    E = xavier_normal(kE, (num_ents, IN_DIM))
    R = xavier_normal(kR, (num_rels * 2, out_ch, in_ch, KER))
    e_W = xavier_normal(kW, (IN_DIM, out_dim))
    # out_layer's Linear(fc_length, IN_DIM, bias=False); PyTorch-default-ish uniform init
    bound = 1.0 / math.sqrt(fc_length)
    W_lin = jax.random.uniform(kL, (IN_DIM, fc_length), jnp.float32, -bound, bound)

    params = dict(
        E=E, R=R, e_W=e_W, W_lin=W_lin, in_ch=in_ch, out_ch=out_ch,
        # one-time hoisted preprocessing (avoid per-call transpose / cast)
        E_bf=E.astype(jnp.bfloat16),
        W_fc_r=W_lin.T.reshape(out_ch, T, IN_DIM),
    )

    e1_idx = jnp.array([3, 17], dtype=jnp.int32)
    r_idx = jnp.array([2, 7], dtype=jnp.int32)

    pred = helper_forward(e1_idx, r_idx, params)
    pred = jax.block_until_ready(pred)
    assert pred.shape == (e1_idx.shape[0], num_ents)
    assert bool(jnp.all((pred >= 0.0) & (pred <= 1.0)))
    print("KERNEL_OK")
</pallas_src>

<mosaic_0001>
module attributes {stable_mosaic.version = 11 : i64} {
  func.func @_prologue_kernel(%arg0: i32, %arg1: memref<2x200xf32, #tpu.memory_space<vmem>>, %arg2: memref<2x4x10x9xf32, #tpu.memory_space<vmem>>, %arg3: memref<200x200xf32, #tpu.memory_space<vmem>>, %arg4: memref<4x12x200xf32, #tpu.memory_space<vmem>>, %arg5: memref<2x200xbf16, #tpu.memory_space<vmem>>, %arg6: memref<2x10x20xf32, #tpu.memory_space<vmem>>) attributes {dimension_semantics = [#tpu.dimension_semantics<arbitrary>], iteration_bounds = array<i64: 1>, scalar_prefetch = 0 : i64, scratch_operands = 1 : i64, tpu.core_type = #tpu.core_type<tc>, window_params = [{pipeline_mode = #tpu.pipeline_mode<synchronous>, transform_indices = @transform_0, window_bounds = array<i64: 2, 200>}, {pipeline_mode = #tpu.pipeline_mode<synchronous>, transform_indices = @transform_1, window_bounds = array<i64: 2, 4, 10, 9>}, {pipeline_mode = #tpu.pipeline_mode<synchronous>, transform_indices = @transform_2, window_bounds = array<i64: 200, 200>}, {pipeline_mode = #tpu.pipeline_mode<synchronous>, transform_indices = @transform_3, window_bounds = array<i64: 4, 12, 200>}, {pipeline_mode = #tpu.pipeline_mode<synchronous>, transform_indices = @transform_4, window_bounds = array<i64: 2, 200>}]} {
    %c0 = arith.constant 0 : index
    %c0_0 = arith.constant 0 : index
    %0 = vector.load %arg1[%c0, %c0_0] : memref<2x200xf32, #tpu.memory_space<vmem>>, vector<2x200xf32>
    %cst = arith.constant 0.999994993 : f32
    %1 = vector.broadcast %cst : f32 to vector<2x200xf32>
    %2 = arith.mulf %0, %1 : vector<2x200xf32>
    %c0_1 = arith.constant 0 : index
    %c0_2 = arith.constant 0 : index
    %3 = vector.load %arg3[%c0_1, %c0_2] : memref<200x200xf32, #tpu.memory_space<vmem>>, vector<200x200xf32>
    %cst_3 = arith.constant dense<0.000000e+00> : vector<2x200xf32>
    %4 = tpu.matmul %2, %3, %cst_3 {dimension_numbers = #tpu.dot_dimension_numbers<[1], [0], [0], [1], [0, 0, 1, 1], [], []>} : vector<2x200xf32>, vector<200x200xf32>, vector<2x200xf32> -> vector<2x200xf32>
    %5 = vector.extract_strided_slice %4 {offsets = [0, 0], sizes = [2, 20], strides = [1, 1]} : vector<2x200xf32> to vector<2x20xf32>
    %c0_4 = arith.constant 0 : index
    %c0_5 = arith.constant 0 : index
    %c0_6 = arith.constant 0 : index
    %6 = vector.load %arg6[%c0_4, %c0_5, %c0_6] : memref<2x10x20xf32, #tpu.memory_space<vmem>>, vector<2x1x20xf32>
    %7 = vector.shape_cast %6 : vector<2x1x20xf32> to vector<2x20xf32>
    %8 = vector.shape_cast %5 : vector<2x20xf32> to vector<2x1x20xf32>
    tpu.vector_store %arg6[%c0_4, %c0_5, %c0_6], %8 {strides = array<i32>} : memref<2x10x20xf32, #tpu.memory_space<vmem>>, vector<2x1x20xf32>,
    %9 = vector.extract_strided_slice %4 {offsets = [0, 20], sizes = [2, 20], strides = [1, 1]} : vector<2x200xf32> to vector<2x20xf32>
    %c0_7 = arith.constant 0 : index
    %c1 = arith.constant 1 : index
    %c0_8 = arith.constant 0 : index
    %10 = vector.load %arg6[%c0_7, %c1, %c0_8] : memref<2x10x20xf32, #tpu.memory_space<vmem>>, vector<2x1x20xf32>
    %11 = vector.shape_cast %10 : vector<2x1x20xf32> to vector<2x20xf32>
    %12 = vector.shape_cast %9 : vector<2x20xf32> to vector<2x1x20xf32>
    tpu.vector_store %arg6[%c0_7, %c1, %c0_8], %12 {strides = array<i32>} : memref<2x10x20xf32, #tpu.memory_space<vmem>>, vector<2x1x20xf32>,
    %13 = vector.extract_strided_slice %4 {offsets = [0, 40], sizes = [2, 20], strides = [1, 1]} : vector<2x200xf32> to vector<2x20xf32>
    %c0_9 = arith.constant 0 : index
    %c2 = arith.constant 2 : index
    %c0_10 = arith.constant 0 : index
    %14 = vector.load %arg6[%c0_9, %c2, %c0_10] : memref<2x10x20xf32, #tpu.memory_space<vmem>>, vector<2x1x20xf32>
    %15 = vector.shape_cast %14 : vector<2x1x20xf32> to vector<2x20xf32>
    %16 = vector.shape_cast %13 : vector<2x20xf32> to vector<2x1x20xf32>
    tpu.vector_store %arg6[%c0_9, %c2, %c0_10], %16 {strides = array<i32>} : memref<2x10x20xf32, #tpu.memory_space<vmem>>, vector<2x1x20xf32>,
    %17 = vector.extract_strided_slice %4 {offsets = [0, 60], sizes = [2, 20], strides = [1, 1]} : vector<2x200xf32> to vector<2x20xf32>
    %c0_11 = arith.constant 0 : index
    %c3 = arith.constant 3 : index
    %c0_12 = arith.constant 0 : index
    %18 = vector.load %arg6[%c0_11, %c3, %c0_12] : memref<2x10x20xf32, #tpu.memory_space<vmem>>, vector<2x1x20xf32>
    %19 = vector.shape_cast %18 : vector<2x1x20xf32> to vector<2x20xf32>
    %20 = vector.shape_cast %17 : vector<2x20xf32> to vector<2x1x20xf32>
    tpu.vector_store %arg6[%c0_11, %c3, %c0_12], %20 {strides = array<i32>} : memref<2x10x20xf32, #tpu.memory_space<vmem>>, vector<2x1x20xf32>,
    %21 = vector.extract_strided_slice %4 {offsets = [0, 80], sizes = [2, 20], strides = [1, 1]} : vector<2x200xf32> to vector<2x20xf32>
    %c0_13 = arith.constant 0 : index
    %c4 = arith.constant 4 : index
    %c0_14 = arith.constant 0 : index
    %22 = vector.load %arg6[%c0_13, %c4, %c0_14] : memref<2x10x20xf32, #tpu.memory_space<vmem>>, vector<2x1x20xf32>
    %23 = vector.shape_cast %22 : vector<2x1x20xf32> to vector<2x20xf32>
    %24 = vector.shape_cast %21 : vector<2x20xf32> to vector<2x1x20xf32>
    tpu.vector_store %arg6[%c0_13, %c4, %c0_14], %24 {strides = array<i32>} : memref<2x10x20xf32, #tpu.memory_space<vmem>>, vector<2x1x20xf32>,
    %25 = vector.extract_strided_slice %4 {offsets = [0, 100], sizes = [2, 20], strides = [1, 1]} : vector<2x200xf32> to vector<2x20xf32>
    %c0_15 = arith.constant 0 : index
    %c5 = arith.constant 5 : index
    %c0_16 = arith.constant 0 : index
    %26 = vector.load %arg6[%c0_15, %c5, %c0_16] : memref<2x10x20xf32, #tpu.memory_space<vmem>>, vector<2x1x20xf32>
    %27 = vector.shape_cast %26 : vector<2x1x20xf32> to vector<2x20xf32>
    %28 = vector.shape_cast %25 : vector<2x20xf32> to vector<2x1x20xf32>
    tpu.vector_store %arg6[%c0_15, %c5, %c0_16], %28 {strides = array<i32>} : memref<2x10x20xf32, #tpu.memory_space<vmem>>, vector<2x1x20xf32>,
    %29 = vector.extract_strided_slice %4 {offsets = [0, 120], sizes = [2, 20], strides = [1, 1]} : vector<2x200xf32> to vector<2x20xf32>
    %c0_17 = arith.constant 0 : index
    %c6 = arith.constant 6 : index
    %c0_18 = arith.constant 0 : index
    %30 = vector.load %arg6[%c0_17, %c6, %c0_18] : memref<2x10x20xf32, #tpu.memory_space<vmem>>, vector<2x1x20xf32>
    %31 = vector.shape_cast %30 : vector<2x1x20xf32> to vector<2x20xf32>
    %32 = vector.shape_cast %29 : vector<2x20xf32> to vector<2x1x20xf32>
    tpu.vector_store %arg6[%c0_17, %c6, %c0_18], %32 {strides = array<i32>} : memref<2x10x20xf32, #tpu.memory_space<vmem>>, vector<2x1x20xf32>,
    %33 = vector.extract_strided_slice %4 {offsets = [0, 140], sizes = [2, 20], strides = [1, 1]} : vector<2x200xf32> to vector<2x20xf32>
    %c0_19 = arith.constant 0 : index
    %c7 = arith.constant 7 : index
    %c0_20 = arith.constant 0 : index
    %34 = vector.load %arg6[%c0_19, %c7, %c0_20] : memref<2x10x20xf32, #tpu.memory_space<vmem>>, vector<2x1x20xf32>
    %35 = vector.shape_cast %34 : vector<2x1x20xf32> to vector<2x20xf32>
    %36 = vector.shape_cast %33 : vector<2x20xf32> to vector<2x1x20xf32>
    tpu.vector_store %arg6[%c0_19, %c7, %c0_20], %36 {strides = array<i32>} : memref<2x10x20xf32, #tpu.memory_space<vmem>>, vector<2x1x20xf32>,
    %37 = vector.extract_strided_slice %4 {offsets = [0, 160], sizes = [2, 20], strides = [1, 1]} : vector<2x200xf32> to vector<2x20xf32>
    %c0_21 = arith.constant 0 : index
    %c8 = arith.constant 8 : index
    %c0_22 = arith.constant 0 : index
    %38 = vector.load %arg6[%c0_21, %c8, %c0_22] : memref<2x10x20xf32, #tpu.memory_space<vmem>>, vector<2x1x20xf32>
    %39 = vector.shape_cast %38 : vector<2x1x20xf32> to vector<2x20xf32>
    %40 = vector.shape_cast %37 : vector<2x20xf32> to vector<2x1x20xf32>
    tpu.vector_store %arg6[%c0_21, %c8, %c0_22], %40 {strides = array<i32>} : memref<2x10x20xf32, #tpu.memory_space<vmem>>, vector<2x1x20xf32>,
    %41 = vector.extract_strided_slice %4 {offsets = [0, 180], sizes = [2, 20], strides = [1, 1]} : vector<2x200xf32> to vector<2x20xf32>
    %c0_23 = arith.constant 0 : index
    %c9 = arith.constant 9 : index
    %c0_24 = arith.constant 0 : index
    %42 = vector.load %arg6[%c0_23, %c9, %c0_24] : memref<2x10x20xf32, #tpu.memory_space<vmem>>, vector<2x1x20xf32>
    %43 = vector.shape_cast %42 : vector<2x1x20xf32> to vector<2x20xf32>
    %44 = vector.shape_cast %41 : vector<2x20xf32> to vector<2x1x20xf32>
    tpu.vector_store %arg6[%c0_23, %c9, %c0_24], %44 {strides = array<i32>} : memref<2x10x20xf32, #tpu.memory_space<vmem>>, vector<2x1x20xf32>,
    %c0_25 = arith.constant 0 : index
    %c0_26 = arith.constant 0 : index
    %c0_27 = arith.constant 0 : index
    %45 = vector.load %arg6[%c0_25, %c0_26, %c0_27] : memref<2x10x20xf32, #tpu.memory_space<vmem>>, vector<2x10x20xf32>
    %c0_28 = arith.constant 0 : index
    %c0_29 = arith.constant 0 : index
    %c0_30 = arith.constant 0 : index
    %c0_31 = arith.constant 0 : index
    %46 = vector.load %arg2[%c0_28, %c0_29, %c0_30, %c0_31] : memref<2x4x10x9xf32, #tpu.memory_space<vmem>>, vector<2x4x10x9xf32>
    %47 = vector.extract_strided_slice %45 {offsets = [0, 0, 0], sizes = [2, 10, 12], strides = [1, 1, 1]} : vector<2x10x20xf32> to vector<2x10x12xf32>
    %48 = vector.extract_strided_slice %45 {offsets = [0, 0, 1], sizes = [2, 10, 12], strides = [1, 1, 1]} : vector<2x10x20xf32> to vector<2x10x12xf32>
    %49 = vector.extract_strided_slice %45 {offsets = [0, 0, 2], sizes = [2, 10, 12], strides = [1, 1, 1]} : vector<2x10x20xf32> to vector<2x10x12xf32>
    %50 = vector.extract_strided_slice %45 {offsets = [0, 0, 3], sizes = [2, 10, 12], strides = [1, 1, 1]} : vector<2x10x20xf32> to vector<2x10x12xf32>
    %51 = vector.extract_strided_slice %45 {offsets = [0, 0, 4], sizes = [2, 10, 12], strides = [1, 1, 1]} : vector<2x10x20xf32> to vector<2x10x12xf32>
    %52 = vector.extract_strided_slice %45 {offsets = [0, 0, 5], sizes = [2, 10, 12], strides = [1, 1, 1]} : vector<2x10x20xf32> to vector<2x10x12xf32>
    %53 = vector.extract_strided_slice %45 {offsets = [0, 0, 6], sizes = [2, 10, 12], strides = [1, 1, 1]} : vector<2x10x20xf32> to vector<2x10x12xf32>
    %54 = vector.extract_strided_slice %45 {offsets = [0, 0, 7], sizes = [2, 10, 12], strides = [1, 1, 1]} : vector<2x10x20xf32> to vector<2x10x12xf32>
    %55 = vector.extract_strided_slice %45 {offsets = [0, 0, 8], sizes = [2, 10, 12], strides = [1, 1, 1]} : vector<2x10x20xf32> to vector<2x10x12xf32>
    %cst_32 = arith.constant 0.000000e+00 : f32
    %56 = vector.broadcast %cst_32 : f32 to vector<2x200xf32>
    %cst_33 = arith.constant 0.000000e+00 : f32
    %57 = vector.broadcast %cst_33 : f32 to vector<2x10x12xf32>
    %58 = vector.extract_strided_slice %46 {offsets = [0, 0, 0, 0], sizes = [2, 1, 10, 1], strides = [1, 1, 1, 1]} : vector<2x4x10x9xf32> to vector<2x1x10x1xf32>
    %59 = vector.shape_cast %58 : vector<2x1x10x1xf32> to vector<2x10x1xf32>
    %60 = vector.broadcast %59 : vector<2x10x1xf32> to vector<2x10x12xf32>
    %61 = arith.mulf %47, %60 : vector<2x10x12xf32>
    %62 = arith.addf %57, %61 : vector<2x10x12xf32>
    %63 = vector.extract_strided_slice %46 {offsets = [0, 0, 0, 1], sizes = [2, 1, 10, 1], strides = [1, 1, 1, 1]} : vector<2x4x10x9xf32> to vector<2x1x10x1xf32>
    %64 = vector.shape_cast %63 : vector<2x1x10x1xf32> to vector<2x10x1xf32>
    %65 = vector.broadcast %64 : vector<2x10x1xf32> to vector<2x10x12xf32>
    %66 = arith.mulf %48, %65 : vector<2x10x12xf32>
    %67 = arith.addf %62, %66 : vector<2x10x12xf32>
    %68 = vector.extract_strided_slice %46 {offsets = [0, 0, 0, 2], sizes = [2, 1, 10, 1], strides = [1, 1, 1, 1]} : vector<2x4x10x9xf32> to vector<2x1x10x1xf32>
    %69 = vector.shape_cast %68 : vector<2x1x10x1xf32> to vector<2x10x1xf32>
    %70 = vector.broadcast %69 : vector<2x10x1xf32> to vector<2x10x12xf32>
    %71 = arith.mulf %49, %70 : vector<2x10x12xf32>
    %72 = arith.addf %67, %71 : vector<2x10x12xf32>
    %73 = vector.extract_strided_slice %46 {offsets = [0, 0, 0, 3], sizes = [2, 1, 10, 1], strides = [1, 1, 1, 1]} : vector<2x4x10x9xf32> to vector<2x1x10x1xf32>
    %74 = vector.shape_cast %73 : vector<2x1x10x1xf32> to vector<2x10x1xf32>
    %75 = vector.broadcast %74 : vector<2x10x1xf32> to vector<2x10x12xf32>
    %76 = arith.mulf %50, %75 : vector<2x10x12xf32>
    %77 = arith.addf %72, %76 : vector<2x10x12xf32>
    %78 = vector.extract_strided_slice %46 {offsets = [0, 0, 0, 4], sizes = [2, 1, 10, 1], strides = [1, 1, 1, 1]} : vector<2x4x10x9xf32> to vector<2x1x10x1xf32>
    %79 = vector.shape_cast %78 : vector<2x1x10x1xf32> to vector<2x10x1xf32>
    %80 = vector.broadcast %79 : vector<2x10x1xf32> to vector<2x10x12xf32>
    %81 = arith.mulf %51, %80 : vector<2x10x12xf32>
    %82 = arith.addf %77, %81 : vector<2x10x12xf32>
    %83 = vector.extract_strided_slice %46 {offsets = [0, 0, 0, 5], sizes = [2, 1, 10, 1], strides = [1, 1, 1, 1]} : vector<2x4x10x9xf32> to vector<2x1x10x1xf32>
    %84 = vector.shape_cast %83 : vector<2x1x10x1xf32> to vector<2x10x1xf32>
    %85 = vector.broadcast %84 : vector<2x10x1xf32> to vector<2x10x12xf32>
    %86 = arith.mulf %52, %85 : vector<2x10x12xf32>
    %87 = arith.addf %82, %86 : vector<2x10x12xf32>
    %88 = vector.extract_strided_slice %46 {offsets = [0, 0, 0, 6], sizes = [2, 1, 10, 1], strides = [1, 1, 1, 1]} : vector<2x4x10x9xf32> to vector<2x1x10x1xf32>
    %89 = vector.shape_cast %88 : vector<2x1x10x1xf32> to vector<2x10x1xf32>
    %90 = vector.broadcast %89 : vector<2x10x1xf32> to vector<2x10x12xf32>
    %91 = arith.mulf %53, %90 : vector<2x10x12xf32>
    %92 = arith.addf %87, %91 : vector<2x10x12xf32>
    %93 = vector.extract_strided_slice %46 {offsets = [0, 0, 0, 7], sizes = [2, 1, 10, 1], strides = [1, 1, 1, 1]} : vector<2x4x10x9xf32> to vector<2x1x10x1xf32>
    %94 = vector.shape_cast %93 : vector<2x1x10x1xf32> to vector<2x10x1xf32>
    %95 = vector.broadcast %94 : vector<2x10x1xf32> to vector<2x10x12xf32>
    %96 = arith.mulf %54, %95 : vector<2x10x12xf32>
    %97 = arith.addf %92, %96 : vector<2x10x12xf32>
    %98 = vector.extract_strided_slice %46 {offsets = [0, 0, 0, 8], sizes = [2, 1, 10, 1], strides = [1, 1, 1, 1]} : vector<2x4x10x9xf32> to vector<2x1x10x1xf32>
    %99 = vector.shape_cast %98 : vector<2x1x10x1xf32> to vector<2x10x1xf32>
    %100 = vector.broadcast %99 : vector<2x10x1xf32> to vector<2x10x12xf32>
    %101 = arith.mulf %55, %100 : vector<2x10x12xf32>
    %102 = arith.addf %97, %101 : vector<2x10x12xf32>
    %cst_34 = arith.constant dense<0.000000e+00> : vector<2x12xf32>
    %103 = vector.multi_reduction <add>, %102, %cst_34 [1] : vector<2x10x12xf32> to vector<2x12xf32>
    %cst_35 = arith.constant 0.999994993 : f32
    %104 = vector.broadcast %cst_35 : f32 to vector<2x12xf32>
    %105 = arith.mulf %103, %104 : vector<2x12xf32>
    %c0_36 = arith.constant 0 : index
    %c0_37 = arith.constant 0 : index
    %c0_38 = arith.constant 0 : index
    %106 = vector.load %arg4[%c0_36, %c0_37, %c0_38] : memref<4x12x200xf32, #tpu.memory_space<vmem>>, vector<1x12x200xf32>
    %107 = vector.shape_cast %106 : vector<1x12x200xf32> to vector<12x200xf32>
    %cst_39 = arith.constant dense<0.000000e+00> : vector<2x200xf32>
    %108 = tpu.matmul %105, %107, %cst_39 {dimension_numbers = #tpu.dot_dimension_numbers<[1], [0], [0], [1], [0, 0, 1, 1], [], []>} : vector<2x12xf32>, vector<12x200xf32>, vector<2x200xf32> -> vector<2x200xf32>
    %109 = arith.addf %56, %108 : vector<2x200xf32>
    %cst_40 = arith.constant 0.000000e+00 : f32
    %110 = vector.broadcast %cst_40 : f32 to vector<2x10x12xf32>
    %111 = vector.extract_strided_slice %46 {offsets = [0, 1, 0, 0], sizes = [2, 1, 10, 1], strides = [1, 1, 1, 1]} : vector<2x4x10x9xf32> to vector<2x1x10x1xf32>
    %112 = vector.shape_cast %111 : vector<2x1x10x1xf32> to vector<2x10x1xf32>
    %113 = vector.broadcast %112 : vector<2x10x1xf32> to vector<2x10x12xf32>
    %114 = arith.mulf %47, %113 : vector<2x10x12xf32>
    %115 = arith.addf %110, %114 : vector<2x10x12xf32>
    %116 = vector.extract_strided_slice %46 {offsets = [0, 1, 0, 1], sizes = [2, 1, 10, 1], strides = [1, 1, 1, 1]} : vector<2x4x10x9xf32> to vector<2x1x10x1xf32>
    %117 = vector.shape_cast %116 : vector<2x1x10x1xf32> to vector<2x10x1xf32>
    %118 = vector.broadcast %117 : vector<2x10x1xf32> to vector<2x10x12xf32>
    %119 = arith.mulf %48, %118 : vector<2x10x12xf32>
    %120 = arith.addf %115, %119 : vector<2x10x12xf32>
    %121 = vector.extract_strided_slice %46 {offsets = [0, 1, 0, 2], sizes = [2, 1, 10, 1], strides = [1, 1, 1, 1]} : vector<2x4x10x9xf32> to vector<2x1x10x1xf32>
    %122 = vector.shape_cast %121 : vector<2x1x10x1xf32> to vector<2x10x1xf32>
    %123 = vector.broadcast %122 : vector<2x10x1xf32> to vector<2x10x12xf32>
    %124 = arith.mulf %49, %123 : vector<2x10x12xf32>
    %125 = arith.addf %120, %124 : vector<2x10x12xf32>
    %126 = vector.extract_strided_slice %46 {offsets = [0, 1, 0, 3], sizes = [2, 1, 10, 1], strides = [1, 1, 1, 1]} : vector<2x4x10x9xf32> to vector<2x1x10x1xf32>
    %127 = vector.shape_cast %126 : vector<2x1x10x1xf32> to vector<2x10x1xf32>
    %128 = vector.broadcast %127 : vector<2x10x1xf32> to vector<2x10x12xf32>
    %129 = arith.mulf %50, %128 : vector<2x10x12xf32>
    %130 = arith.addf %125, %129 : vector<2x10x12xf32>
    %131 = vector.extract_strided_slice %46 {offsets = [0, 1, 0, 4], sizes = [2, 1, 10, 1], strides = [1, 1, 1, 1]} : vector<2x4x10x9xf32> to vector<2x1x10x1xf32>
    %132 = vector.shape_cast %131 : vector<2x1x10x1xf32> to vector<2x10x1xf32>
    %133 = vector.broadcast %132 : vector<2x10x1xf32> to vector<2x10x12xf32>
    %134 = arith.mulf %51, %133 : vector<2x10x12xf32>
    %135 = arith.addf %130, %134 : vector<2x10x12xf32>
    %136 = vector.extract_strided_slice %46 {offsets = [0, 1, 0, 5], sizes = [2, 1, 10, 1], strides = [1, 1, 1, 1]} : vector<2x4x10x9xf32> to vector<2x1x10x1xf32>
    %137 = vector.shape_cast %136 : vector<2x1x10x1xf32> to vector<2x10x1xf32>
    %138 = vector.broadcast %137 : vector<2x10x1xf32> to vector<2x10x12xf32>
    %139 = arith.mulf %52, %138 : vector<2x10x12xf32>
    %140 = arith.addf %135, %139 : vector<2x10x12xf32>
    %141 = vector.extract_strided_slice %46 {offsets = [0, 1, 0, 6], sizes = [2, 1, 10, 1], strides = [1, 1, 1, 1]} : vector<2x4x10x9xf32> to vector<2x1x10x1xf32>
    %142 = vector.shape_cast %141 : vector<2x1x10x1xf32> to vector<2x10x1xf32>
    %143 = vector.broadcast %142 : vector<2x10x1xf32> to vector<2x10x12xf32>
    %144 = arith.mulf %53, %143 : vector<2x10x12xf32>
    %145 = arith.addf %140, %144 : vector<2x10x12xf32>
    %146 = vector.extract_strided_slice %46 {offsets = [0, 1, 0, 7], sizes = [2, 1, 10, 1], strides = [1, 1, 1, 1]} : vector<2x4x10x9xf32> to vector<2x1x10x1xf32>
    %147 = vector.shape_cast %146 : vector<2x1x10x1xf32> to vector<2x10x1xf32>
    %148 = vector.broadcast %147 : vector<2x10x1xf32> to vector<2x10x12xf32>
    %149 = arith.mulf %54, %148 : vector<2x10x12xf32>
    %150 = arith.addf %145, %149 : vector<2x10x12xf32>
    %151 = vector.extract_strided_slice %46 {offsets = [0, 1, 0, 8], sizes = [2, 1, 10, 1], strides = [1, 1, 1, 1]} : vector<2x4x10x9xf32> to vector<2x1x10x1xf32>
    %152 = vector.shape_cast %151 : vector<2x1x10x1xf32> to vector<2x10x1xf32>
    %153 = vector.broadcast %152 : vector<2x10x1xf32> to vector<2x10x12xf32>
    %154 = arith.mulf %55, %153 : vector<2x10x12xf32>
    %155 = arith.addf %150, %154 : vector<2x10x12xf32>
    %cst_41 = arith.constant dense<0.000000e+00> : vector<2x12xf32>
    %156 = vector.multi_reduction <add>, %155, %cst_41 [1] : vector<2x10x12xf32> to vector<2x12xf32>
    %cst_42 = arith.constant 0.999994993 : f32
    %157 = vector.broadcast %cst_42 : f32 to vector<2x12xf32>
    %158 = arith.mulf %156, %157 : vector<2x12xf32>
    %c1_43 = arith.constant 1 : index
    %c0_44 = arith.constant 0 : index
    %c0_45 = arith.constant 0 : index
    %159 = vector.load %arg4[%c1_43, %c0_44, %c0_45] : memref<4x12x200xf32, #tpu.memory_space<vmem>>, vector<1x12x200xf32>
    %160 = vector.shape_cast %159 : vector<1x12x200xf32> to vector<12x200xf32>
    %cst_46 = arith.constant dense<0.000000e+00> : vector<2x200xf32>
    %161 = tpu.matmul %158, %160, %cst_46 {dimension_numbers = #tpu.dot_dimension_numbers<[1], [0], [0], [1], [0, 0, 1, 1], [], []>} : vector<2x12xf32>, vector<12x200xf32>, vector<2x200xf32> -> vector<2x200xf32>
    %162 = arith.addf %109, %161 : vector<2x200xf32>
    %cst_47 = arith.constant 0.000000e+00 : f32
    %163 = vector.broadcast %cst_47 : f32 to vector<2x10x12xf32>
    %164 = vector.extract_strided_slice %46 {offsets = [0, 2, 0, 0], sizes = [2, 1, 10, 1], strides = [1, 1, 1, 1]} : vector<2x4x10x9xf32> to vector<2x1x10x1xf32>
    %165 = vector.shape_cast %164 : vector<2x1x10x1xf32> to vector<2x10x1xf32>
    %166 = vector.broadcast %165 : vector<2x10x1xf32> to vector<2x10x12xf32>
    %167 = arith.mulf %47, %166 : vector<2x10x12xf32>
    %168 = arith.addf %163, %167 : vector<2x10x12xf32>
    %169 = vector.extract_strided_slice %46 {offsets = [0, 2, 0, 1], sizes = [2, 1, 10, 1], strides = [1, 1, 1, 1]} : vector<2x4x10x9xf32> to vector<2x1x10x1xf32>
    %170 = vector.shape_cast %169 : vector<2x1x10x1xf32> to vector<2x10x1xf32>
    %171 = vector.broadcast %170 : vector<2x10x1xf32> to vector<2x10x12xf32>
    %172 = arith.mulf %48, %171 : vector<2x10x12xf32>
    %173 = arith.addf %168, %172 : vector<2x10x12xf32>
    %174 = vector.extract_strided_slice %46 {offsets = [0, 2, 0, 2], sizes = [2, 1, 10, 1], strides = [1, 1, 1, 1]} : vector<2x4x10x9xf32> to vector<2x1x10x1xf32>
    %175 = vector.shape_cast %174 : vector<2x1x10x1xf32> to vector<2x10x1xf32>
    %176 = vector.broadcast %175 : vector<2x10x1xf32> to vector<2x10x12xf32>
    %177 = arith.mulf %49, %176 : vector<2x10x12xf32>
    %178 = arith.addf %173, %177 : vector<2x10x12xf32>
    %179 = vector.extract_strided_slice %46 {offsets = [0, 2, 0, 3], sizes = [2, 1, 10, 1], strides = [1, 1, 1, 1]} : vector<2x4x10x9xf32> to vector<2x1x10x1xf32>
    %180 = vector.shape_cast %179 : vector<2x1x10x1xf32> to vector<2x10x1xf32>
    %181 = vector.broadcast %180 : vector<2x10x1xf32> to vector<2x10x12xf32>
    %182 = arith.mulf %50, %181 : vector<2x10x12xf32>
    %183 = arith.addf %178, %182 : vector<2x10x12xf32>
    %184 = vector.extract_strided_slice %46 {offsets = [0, 2, 0, 4], sizes = [2, 1, 10, 1], strides = [1, 1, 1, 1]} : vector<2x4x10x9xf32> to vector<2x1x10x1xf32>
    %185 = vector.shape_cast %184 : vector<2x1x10x1xf32> to vector<2x10x1xf32>
    %186 = vector.broadcast %185 : vector<2x10x1xf32> to vector<2x10x12xf32>
    %187 = arith.mulf %51, %186 : vector<2x10x12xf32>
    %188 = arith.addf %183, %187 : vector<2x10x12xf32>
    %189 = vector.extract_strided_slice %46 {offsets = [0, 2, 0, 5], sizes = [2, 1, 10, 1], strides = [1, 1, 1, 1]} : vector<2x4x10x9xf32> to vector<2x1x10x1xf32>
    %190 = vector.shape_cast %189 : vector<2x1x10x1xf32> to vector<2x10x1xf32>
    %191 = vector.broadcast %190 : vector<2x10x1xf32> to vector<2x10x12xf32>
    %192 = arith.mulf %52, %191 : vector<2x10x12xf32>
    %193 = arith.addf %188, %192 : vector<2x10x12xf32>
    %194 = vector.extract_strided_slice %46 {offsets = [0, 2, 0, 6], sizes = [2, 1, 10, 1], strides = [1, 1, 1, 1]} : vector<2x4x10x9xf32> to vector<2x1x10x1xf32>
    %195 = vector.shape_cast %194 : vector<2x1x10x1xf32> to vector<2x10x1xf32>
    %196 = vector.broadcast %195 : vector<2x10x1xf32> to vector<2x10x12xf32>
    %197 = arith.mulf %53, %196 : vector<2x10x12xf32>
    %198 = arith.addf %193, %197 : vector<2x10x12xf32>
    %199 = vector.extract_strided_slice %46 {offsets = [0, 2, 0, 7], sizes = [2, 1, 10, 1], strides = [1, 1, 1, 1]} : vector<2x4x10x9xf32> to vector<2x1x10x1xf32>
    %200 = vector.shape_cast %199 : vector<2x1x10x1xf32> to vector<2x10x1xf32>
    %201 = vector.broadcast %200 : vector<2x10x1xf32> to vector<2x10x12xf32>
    %202 = arith.mulf %54, %201 : vector<2x10x12xf32>
    %203 = arith.addf %198, %202 : vector<2x10x12xf32>
    %204 = vector.extract_strided_slice %46 {offsets = [0, 2, 0, 8], sizes = [2, 1, 10, 1], strides = [1, 1, 1, 1]} : vector<2x4x10x9xf32> to vector<2x1x10x1xf32>
    %205 = vector.shape_cast %204 : vector<2x1x10x1xf32> to vector<2x10x1xf32>
    %206 = vector.broadcast %205 : vector<2x10x1xf32> to vector<2x10x12xf32>
    %207 = arith.mulf %55, %206 : vector<2x10x12xf32>
    %208 = arith.addf %203, %207 : vector<2x10x12xf32>
    %cst_48 = arith.constant dense<0.000000e+00> : vector<2x12xf32>
    %209 = vector.multi_reduction <add>, %208, %cst_48 [1] : vector<2x10x12xf32> to vector<2x12xf32>
    %cst_49 = arith.constant 0.999994993 : f32
    %210 = vector.broadcast %cst_49 : f32 to vector<2x12xf32>
    %211 = arith.mulf %209, %210 : vector<2x12xf32>
    %c2_50 = arith.constant 2 : index
    %c0_51 = arith.constant 0 : index
    %c0_52 = arith.constant 0 : index
    %212 = vector.load %arg4[%c2_50, %c0_51, %c0_52] : memref<4x12x200xf32, #tpu.memory_space<vmem>>, vector<1x12x200xf32>
    %213 = vector.shape_cast %212 : vector<1x12x200xf32> to vector<12x200xf32>
    %cst_53 = arith.constant dense<0.000000e+00> : vector<2x200xf32>
    %214 = tpu.matmul %211, %213, %cst_53 {dimension_numbers = #tpu.dot_dimension_numbers<[1], [0], [0], [1], [0, 0, 1, 1], [], []>} : vector<2x12xf32>, vector<12x200xf32>, vector<2x200xf32> -> vector<2x200xf32>
    %215 = arith.addf %162, %214 : vector<2x200xf32>
    %cst_54 = arith.constant 0.000000e+00 : f32
    %216 = vector.broadcast %cst_54 : f32 to vector<2x10x12xf32>
    %217 = vector.extract_strided_slice %46 {offsets = [0, 3, 0, 0], sizes = [2, 1, 10, 1], strides = [1, 1, 1, 1]} : vector<2x4x10x9xf32> to vector<2x1x10x1xf32>
    %218 = vector.shape_cast %217 : vector<2x1x10x1xf32> to vector<2x10x1xf32>
    %219 = vector.broadcast %218 : vector<2x10x1xf32> to vector<2x10x12xf32>
    %220 = arith.mulf %47, %219 : vector<2x10x12xf32>
    %221 = arith.addf %216, %220 : vector<2x10x12xf32>
    %222 = vector.extract_strided_slice %46 {offsets = [0, 3, 0, 1], sizes = [2, 1, 10, 1], strides = [1, 1, 1, 1]} : vector<2x4x10x9xf32> to vector<2x1x10x1xf32>
    %223 = vector.shape_cast %222 : vector<2x1x10x1xf32> to vector<2x10x1xf32>
    %224 = vector.broadcast %223 : vector<2x10x1xf32> to vector<2x10x12xf32>
    %225 = arith.mulf %48, %224 : vector<2x10x12xf32>
    %226 = arith.addf %221, %225 : vector<2x10x12xf32>
    %227 = vector.extract_strided_slice %46 {offsets = [0, 3, 0, 2], sizes = [2, 1, 10, 1], strides = [1, 1, 1, 1]} : vector<2x4x10x9xf32> to vector<2x1x10x1xf32>
    %228 = vector.shape_cast %227 : vector<2x1x10x1xf32> to vector<2x10x1xf32>
    %229 = vector.broadcast %228 : vector<2x10x1xf32> to vector<2x10x12xf32>
    %230 = arith.mulf %49, %229 : vector<2x10x12xf32>
    %231 = arith.addf %226, %230 : vector<2x10x12xf32>
    %232 = vector.extract_strided_slice %46 {offsets = [0, 3, 0, 3], sizes = [2, 1, 10, 1], strides = [1, 1, 1, 1]} : vector<2x4x10x9xf32> to vector<2x1x10x1xf32>
    %233 = vector.shape_cast %232 : vector<2x1x10x1xf32> to vector<2x10x1xf32>
    %234 = vector.broadcast %233 : vector<2x10x1xf32> to vector<2x10x12xf32>
    %235 = arith.mulf %50, %234 : vector<2x10x12xf32>
    %236 = arith.addf %231, %235 : vector<2x10x12xf32>
    %237 = vector.extract_strided_slice %46 {offsets = [0, 3, 0, 4], sizes = [2, 1, 10, 1], strides = [1, 1, 1, 1]} : vector<2x4x10x9xf32> to vector<2x1x10x1xf32>
    %238 = vector.shape_cast %237 : vector<2x1x10x1xf32> to vector<2x10x1xf32>
    %239 = vector.broadcast %238 : vector<2x10x1xf32> to vector<2x10x12xf32>
    %240 = arith.mulf %51, %239 : vector<2x10x12xf32>
    %241 = arith.addf %236, %240 : vector<2x10x12xf32>
    %242 = vector.extract_strided_slice %46 {offsets = [0, 3, 0, 5], sizes = [2, 1, 10, 1], strides = [1, 1, 1, 1]} : vector<2x4x10x9xf32> to vector<2x1x10x1xf32>
    %243 = vector.shape_cast %242 : vector<2x1x10x1xf32> to vector<2x10x1xf32>
    %244 = vector.broadcast %243 : vector<2x10x1xf32> to vector<2x10x12xf32>
    %245 = arith.mulf %52, %244 : vector<2x10x12xf32>
    %246 = arith.addf %241, %245 : vector<2x10x12xf32>
    %247 = vector.extract_strided_slice %46 {offsets = [0, 3, 0, 6], sizes = [2, 1, 10, 1], strides = [1, 1, 1, 1]} : vector<2x4x10x9xf32> to vector<2x1x10x1xf32>
    %248 = vector.shape_cast %247 : vector<2x1x10x1xf32> to vector<2x10x1xf32>
    %249 = vector.broadcast %248 : vector<2x10x1xf32> to vector<2x10x12xf32>
    %250 = arith.mulf %53, %249 : vector<2x10x12xf32>
    %251 = arith.addf %246, %250 : vector<2x10x12xf32>
    %252 = vector.extract_strided_slice %46 {offsets = [0, 3, 0, 7], sizes = [2, 1, 10, 1], strides = [1, 1, 1, 1]} : vector<2x4x10x9xf32> to vector<2x1x10x1xf32>
    %253 = vector.shape_cast %252 : vector<2x1x10x1xf32> to vector<2x10x1xf32>
    %254 = vector.broadcast %253 : vector<2x10x1xf32> to vector<2x10x12xf32>
    %255 = arith.mulf %54, %254 : vector<2x10x12xf32>
    %256 = arith.addf %251, %255 : vector<2x10x12xf32>
    %257 = vector.extract_strided_slice %46 {offsets = [0, 3, 0, 8], sizes = [2, 1, 10, 1], strides = [1, 1, 1, 1]} : vector<2x4x10x9xf32> to vector<2x1x10x1xf32>
    %258 = vector.shape_cast %257 : vector<2x1x10x1xf32> to vector<2x10x1xf32>
    %259 = vector.broadcast %258 : vector<2x10x1xf32> to vector<2x10x12xf32>
    %260 = arith.mulf %55, %259 : vector<2x10x12xf32>
    %261 = arith.addf %256, %260 : vector<2x10x12xf32>
    %cst_55 = arith.constant dense<0.000000e+00> : vector<2x12xf32>
    %262 = vector.multi_reduction <add>, %261, %cst_55 [1] : vector<2x10x12xf32> to vector<2x12xf32>
    %cst_56 = arith.constant 0.999994993 : f32
    %263 = vector.broadcast %cst_56 : f32 to vector<2x12xf32>
    %264 = arith.mulf %262, %263 : vector<2x12xf32>
    %c3_57 = arith.constant 3 : index
    %c0_58 = arith.constant 0 : index
    %c0_59 = arith.constant 0 : index
    %265 = vector.load %arg4[%c3_57, %c0_58, %c0_59] : memref<4x12x200xf32, #tpu.memory_space<vmem>>, vector<1x12x200xf32>
    %266 = vector.shape_cast %265 : vector<1x12x200xf32> to vector<12x200xf32>
    %cst_60 = arith.constant dense<0.000000e+00> : vector<2x200xf32>
    %267 = tpu.matmul %264, %266, %cst_60 {dimension_numbers = #tpu.dot_dimension_numbers<[1], [0], [0], [1], [0, 0, 1, 1], [], []>} : vector<2x12xf32>, vector<12x200xf32>, vector<2x200xf32> -> vector<2x200xf32>
    %268 = arith.addf %215, %267 : vector<2x200xf32>
    %cst_61 = arith.constant 0.999994993 : f32
    %269 = vector.broadcast %cst_61 : f32 to vector<2x200xf32>
    %270 = arith.mulf %268, %269 : vector<2x200xf32>
    %271 = math.tanh %270 : vector<2x200xf32>
    %272 = arith.truncf %271 : vector<2x200xf32> to vector<2x200xbf16>
    %c0_62 = arith.constant 0 : index
    %c0_63 = arith.constant 0 : index
    %273 = vector.load %arg5[%c0_62, %c0_63] : memref<2x200xbf16, #tpu.memory_space<vmem>>, vector<2x200xbf16>
    tpu.vector_store %arg5[%c0_62, %c0_63], %272 {strides = array<i32>} : memref<2x200xbf16, #tpu.memory_space<vmem>>, vector<2x200xbf16>,
    return
  }
  func.func @transform_0(%arg0: i32) -> (i32, i32) {
    %c0_i32 = arith.constant 0 : i32
    %c0_i32_0 = arith.constant 0 : i32
    %c0_i32_1 = arith.constant 0 : i32
    return %c0_i32, %c0_i32_0 : i32, i32
  }
  func.func @transform_1(%arg0: i32) -> (i32, i32, i32, i32) {
    %c0_i32 = arith.constant 0 : i32
    %c0_i32_0 = arith.constant 0 : i32
    %c0_i32_1 = arith.constant 0 : i32
    %c0_i32_2 = arith.constant 0 : i32
    %c0_i32_3 = arith.constant 0 : i32
    return %c0_i32, %c0_i32_0, %c0_i32_1, %c0_i32_2 : i32, i32, i32, i32
  }
  func.func @transform_2(%arg0: i32) -> (i32, i32) {
    %c0_i32 = arith.constant 0 : i32
    %c0_i32_0 = arith.constant 0 : i32
    %c0_i32_1 = arith.constant 0 : i32
    return %c0_i32, %c0_i32_0 : i32, i32
  }
  func.func @transform_3(%arg0: i32) -> (i32, i32, i32) {
    %c0_i32 = arith.constant 0 : i32
    %c0_i32_0 = arith.constant 0 : i32
    %c0_i32_1 = arith.constant 0 : i32
    %c0_i32_2 = arith.constant 0 : i32
    return %c0_i32, %c0_i32_0, %c0_i32_1 : i32, i32, i32
  }
  func.func @transform_4(%arg0: i32) -> (i32, i32) {
    %c0_i32 = arith.constant 0 : i32
    %c0_i32_0 = arith.constant 0 : i32
    %c0_i32_1 = arith.constant 0 : i32
    return %c0_i32, %c0_i32_0 : i32, i32
  }
}

</mosaic_0001>

<bundles_post_ra>
// kernel: tpu_custom_call.1
= control target key start
LH: loop header
LB: loop body
LE: loop exit
PB: predicated region body
PF: predicated region fallthrough
CT: control target
= control target key end

     0   :  { %v4004_v3 = vmov 0   ;;  %v4018_v12 = vmov 2   ;;  %v2453_v29 = vmov 1983009808   ;;  %v74_v31 = vlaneseq  ;;  %s3999_s0 = inlined_call_operand.vmem [shape: f32[2,200], index: 0, kind: input, shape index: {}]   ;;  %s4000_s1 = inlined_call_operand.vmem [shape: f32[2,4,10,9], index: 1, kind: input, shape index: {}]   ;;  %s4001_s2 = inlined_call_operand.vmem [shape: f32[200,200], index: 2, kind: input, shape index: {}]   ;;  %s4002_s3 = inlined_call_operand.vmem [shape: f32[4,12,200], index: 3, kind: input, shape index: {}]   ;;  %s4003_s4 = inlined_call_operand.hbm [shape: bf16[2,200], index: 4, kind: output, shape index: {}]  }
   0x1   :  { %v2510_v0 = vld [vmem:[%s4000_s1 + $0x8] sm:$0x3]  ;;  %v23_v2 = vld [vmem:[%s4001_s2 + $0x18] sm:$0xff]  ;;  %2363 = vset.pattern.permute.xlu1 %v4004_v3  ;;  %v20_v5 = vld [vmem:[%s4001_s2] sm:$0xff]  ;;  %2365 = vset.pattern.permute.xlu0 %v4018_v12  ;;  %v72_v30 = vunpack.c.l.s4 %v2453_v29  ;;  %v4020_v32 = vmov 1  }
   0x2   :  { %v21_v1 = vld [vmem:[%s4001_s2 + $0x8] sm:$0xff]  ;;  %v22_v6 = vld [vmem:[%s4001_s2 + $0x10] sm:$0xff]  ;;  %v2528_v7 = vld [vmem:[%s4000_s1 + $0x40] sm:$0xff]  ;;  %366 = vperm.xlu1 %2363, %v2510_v0   ;;  %v2595_v40 = vshrl.u32 %v74_v31, 7 }
   0x3   :  { %v2254_v4 = vpack.c.bf16 %v23_v2, %v21_v1  ;;  %v2256_v8 = vpack.c.bf16 %v22_v6, %v20_v5  ;;  %v25_v9 = vld [vmem:[%s4001_s2 + $0x28] sm:$0xff]  ;;  %v27_v10 = vld [vmem:[%s4001_s2 + $0x38] sm:$0xff]  ;;  %v24_v11 = vld [vmem:[%s4001_s2 + $0x20] sm:$0xff]  ;;  %v73_v39 = vunpack.c.0.s8 %v72_v30 }
   0x4   :  { %v2258_v13 = vpack.c.bf16 %v27_v10, %v25_v9  ;;  %v26_v14 = vld [vmem:[%s4001_s2 + $0x30] sm:$0xff]  ;;  %v2547_v15 = vld [vmem:[%s4000_s1] sm:$0xff]  ;;  %v29_v16 = vld [vmem:[%s4001_s2 + $0x48] sm:$0xff] }
   0x5   :  { %2255 = vmatprep.subr.bf16.mxu0 %v2254_v4  ;;  %v2260_v17 = vpack.c.bf16 %v26_v14, %v24_v11  ;;  %v31_v18 = vld [vmem:[%s4001_s2 + $0x58] sm:$0xff]  ;;  %428 = vperm.xlu0 %2365, %v2547_v15   ;;  %v28_v20 = vld [vmem:[%s4001_s2 + $0x40] sm:$0xff]  ;;  %v30_v21 = vld [vmem:[%s4001_s2 + $0x50] sm:$0xff]  ;;  %v76_v47 = vsub.s32 %v73_v39, %v2595_v40 }
   0x6   :  { %2257 = vmatpush1.bf16.msra.mxu0 %v2256_v8  ;;  %v2262_v19 = vpack.c.bf16 %v31_v18, %v29_v16  ;;  %371 = vperm.xlu1 %2363, %v2528_v7   ;;  %v33_v22 = vld [vmem:[%s4001_s2 + $0x68] sm:$0xff]  ;;  %v35_v23 = vld [vmem:[%s4001_s2 + $0x78] sm:$0xff]  ;;  %v2264_v25 = vpack.c.bf16 %v30_v21, %v28_v20  ;;  %v32_v27 = vld [vmem:[%s4001_s2 + $0x60] sm:$0xff] }
   0x7   :  { %2259 = vmatprep.subr.bf16.mxu0 %v2258_v13  ;;  %v2572_v24 = vld [vmem:[%s4000_s1 + $0x48] sm:$0x3]  ;;  %v2266_v26 = vpack.c.bf16 %v35_v23, %v33_v22  ;;  %v34_v28 = vld [vmem:[%s4001_s2 + $0x70] sm:$0xff]  ;;  %v39_v34 = vld [vmem:[%s4001_s2 + $0x98] sm:$0xff] }
   0x8   :  { %v37_v33 = vld [vmem:[%s4001_s2 + $0x88] sm:$0xff]  ;;  %v2268_v35 = vpack.c.bf16 %v34_v28, %v32_v27  ;;  %v36_v37 = vld [vmem:[%s4001_s2 + $0x80] sm:$0xff]  ;;  %v38_v38 = vld [vmem:[%s4001_s2 + $0x90] sm:$0xff] }
   0x9   :  { %440 = vperm.xlu0 %2365, %v2572_v24   ;;  %v2270_v36 = vpack.c.bf16 %v39_v34, %v37_v33  ;;  %v41_v41 = vld [vmem:[%s4001_s2 + $0xa8] sm:$0xff]  ;;  %v43_v42 = vld [vmem:[%s4001_s2 + $0xb8] sm:$0xff]  ;;  %v2272_v43 = vpack.c.bf16 %v38_v38, %v36_v37  ;;  %v40_v45 = vld [vmem:[%s4001_s2 + $0xa0] sm:$0xff] }
   0xa   :  { %2261 = vmatpush1.bf16.msra.mxu0 %v2260_v17  ;;  %2364 = vset.pattern.permute.xlu1 %v4020_v32  ;;  %v2274_v44 = vpack.c.bf16 %v43_v42, %v41_v41  ;;  %v42_v46 = vld [vmem:[%s4001_s2 + $0xb0] sm:$0xff]  ;;  %v45_v48 = vld [vmem:[%s4001_s2 + $0xc8] sm:$0xff]  ;;  %v47_v49 = vld [vmem:[%s4001_s2 + $0xd8] sm:$0xff] }
   0xb   :  { %2263 = vmatprep.subr.bf16.mxu0 %v2262_v19  ;;  %388 = vperm.xlu1 %2364, %v2547_v15   ;;  %v18_v50 = vld [vmem:[%s3999_s0] sm:$0xf]  ;;  %v2624_v52 = vld [vmem:[%s4000_s1 + $0x18] sm:$0x3]  ;;  %v2276_v53 = vpack.c.bf16 %v42_v46, %v40_v45 }
   0xc   :  { %v19_v51 = vmul.f32 0.999995, %v18_v50 }
   0xd   :  { %806 = vperm.xlu0 %2365, %v2624_v52  }
   0xe   :  { %2265 = vmatpush1.bf16.msra.mxu0 %v2264_v25 }
   0xf   :  { %2267 = vmatprep.subr.bf16.mxu0 %v2266_v26  ;;  %396 = vperm.xlu1 %2364, %v2528_v7  }
  0x12   :  { %2269 = vmatpush1.bf16.msra.mxu0 %v2268_v35 }
  0x13   :  { %2271 = vmatprep.subr.bf16.mxu0 %v2270_v36  ;;  %400 = vperm.xlu1 %2364, %v2572_v24  }
  0x16   :  { %2273 = vmatpush1.bf16.msra.mxu0 %v2272_v43 }
  0x17   :  { %9 = vsyncpa [#allocation4], 0  ;;  %2275 = vmatprep.subr.bf16.mxu0 %v2274_v44  ;;  %v2278_v54 = vpack.c.bf16 %v47_v49, %v45_v48  ;;  %v44_v55 = vld [vmem:[%s4001_s2 + $0xc0] sm:$0xff]  ;;  %v46_v56 = vld [vmem:[%s4001_s2 + $0xd0] sm:$0xff]  ;;  %v2633_v57 = vrot.slane %v19_v51, %v76_v47  ;;  %vm80_vm0 = vcmask 588800   ;;  %2366 = vset.pattern.permute.xlu1 %v4018_v12  ;;  %v4014_v5 = vmov 3  }
  0x18   :  { %v49_v58 = vld [vmem:[%s4001_s2 + $0xe8] sm:$0xff]  ;;  %v51_v59 = vld [vmem:[%s4001_s2 + $0xf8] sm:$0xff]  ;;  %432 = vperm.xlu1 %2366, %v2510_v0   ;;  %v2280_v61 = vpack.c.bf16 %v46_v56, %v44_v55  ;;  %v48_v63 = vld [vmem:[%s4001_s2 + $0xe0] sm:$0xff]  ;;  %2376 = vset.pattern.permute.xlu0 %v4014_v5  ;;  %v4012_v30 = vmov 4   ;;  %v4008_v39 = vmov 5   ;;  %v4016_v41 = vmov 6  }
  0x19   :  { %v78_v60 = vcombine.high %v2633_v57, %v2633_v57  ;;  %v2282_v62 = vpack.c.bf16 %v51_v59, %v49_v58  ;;  %v50_v1 = vld [vmem:[%s4001_s2 + $0xf0] sm:$0xff]  ;;  %v53_v2 = vld [vmem:[%s4001_s2 + $0x108] sm:$0xff]  ;;  %v55_v4 = vld [vmem:[%s4001_s2 + $0x118] sm:$0xff]  ;;  %472 = vperm.xlu0 %2376, %v2510_v0   ;;  %v4010_v42 = vmov 7   ;;  %v4006_v43 = vmov 8   ;;  %s2462_s7 = smov 88  }
  0x1a   :  { %2277 = vmatpush1.bf16.msra.mxu0 %v2276_v53  ;;  %v2284_v6 = vpack.c.bf16 %v50_v1, %v48_v63  ;;  %v2286_v8 = vpack.c.bf16 %v55_v4, %v53_v2  ;;  %v52_v9 = vld [vmem:[%s4001_s2 + $0x100] sm:$0xff]  ;;  %v54_v10 = vld [vmem:[%s4001_s2 + $0x110] sm:$0xff]  ;;  %v57_v11 = vld [vmem:[%s4001_s2 + $0x128] sm:$0xff]  ;;  %vm179_vm1 = vcmask 155648   ;;  %s2463_s8 = smov 108   ;;  %s2464_s9 = smov 68  }
  0x1b   :  { %2279 = vmatprep.subr.bf16.mxu0 %v2278_v54  ;;  %2228 = vmatprep.mubr.msk.f32.mxu0 %vm80_vm0, %v78_v60  ;;  %v59_v13 = vld [vmem:[%s4001_s2 + $0x138] sm:$0xff]  ;;  %v2675_v14 = vld [vmem:[%s4000_s1 + $0x10] sm:$0xff]  ;;  %v2288_v16 = vpack.c.bf16 %v54_v10, %v52_v9  ;;  %v56_v18 = vld [vmem:[%s4001_s2 + $0x120] sm:$0xff]  ;;  %s2465_s10 = smov 48   ;;  %s2466_s11 = smov 28   ;;  %vm278_vm2 = vcmask 64512  }
  0x1c   :  { %436 = vperm.xlu1 %2366, %v2528_v7   ;;  %v2290_v17 = vpack.c.bf16 %v59_v13, %v57_v11  ;;  %v58_v19 = vld [vmem:[%s4001_s2 + $0x130] sm:$0xff]  ;;  %v61_v20 = vld [vmem:[%s4001_s2 + $0x148] sm:$0xff]  ;;  %v63_v21 = vld [vmem:[%s4001_s2 + $0x158] sm:$0xff]  ;;  %s2467_s12 = smov 116   ;;  %s2468_s13 = smov 96   ;;  %vm1112_vm3 = vcmask 1043456  }
  0x1d   :  { %842 = vperm.xlu0 %2376, %v2675_v14   ;;  %v2695_v22 = vld [vmem:[%s4000_s1 + $0x58] sm:$0x3]  ;;  %v2292_v23 = vpack.c.bf16 %v58_v19, %v56_v18  ;;  %v2294_v25 = vpack.c.bf16 %v63_v21, %v61_v20  ;;  %v60_v26 = vld [vmem:[%s4001_s2 + $0x140] sm:$0xff]  ;;  %v62_v27 = vld [vmem:[%s4001_s2 + $0x150] sm:$0xff]  ;;  %v2461_v19 = vmov 1966171168  }
  0x1e   :  { %2281 = vmatpush1.bf16.msra.mxu0 %v2280_v61  ;;  %v65_v28 = vld [vmem:[%s4001_s2 + $0x168] sm:$0xff]  ;;  %v67_v29 = vld [vmem:[%s4001_s2 + $0x178] sm:$0xff]  ;;  %v2296_v31 = vpack.c.bf16 %v62_v27, %v60_v26  ;;  %v64_v34 = vld [vmem:[%s4001_s2 + $0x160] sm:$0xff]  ;;  %v156_v20 = vunpack.c.l.s4 %v2461_v19  ;;  %s2469_s14 = smov 8   ;;  %s2470_s15 = smov 76   ;;  %vm2479_vm4 = vmmov 1  }
  0x1f   :  { %2283 = vmatprep.subr.bf16.mxu0 %v2282_v62  ;;  %v2298_v33 = vpack.c.bf16 %v67_v29, %v65_v28  ;;  %v66_v35 = vld [vmem:[%s4001_s2 + $0x170] sm:$0xff]  ;;  %v69_v37 = vld [vmem:[%s4001_s2 + $0x188] sm:$0xff]  ;;  %v68_v38 = vld [vmem:[%s4001_s2 + $0x180] sm:$0xff]  ;;  %v2909_v29 = vsub.s32 0, %v2595_v40  ;;  %s2471_s16 = smov 127   ;;  %s2472_s17 = smov 126  }
  0x20   :  { %2367 = vset.pattern.permute.xlu1 %v4014_v5  ;;  %v2300_v36 = vpack.c.bf16 %v66_v35, %v64_v34  ;;  %v353_v44 = vld [vmem:[%s4000_s1 + $0x50] sm:$0xff]  ;;  %v2845_v61 = vld [vmem:[%s4000_s1 + $0x20] sm:$0xff]  ;;  %v2857_v1 = vld [vmem:[%s4000_s1 + $0x68] sm:$0x3]  ;;  %s2473_s18 = smov 125   ;;  %s2474_s19 = smov 124  }
  0x21   :  { %468 = vperm.xlu1 %2367, %v2547_v15   ;;  %854 = vperm.xlu0 %2376, %v2695_v22   ;;  %4039 = vst [vmem:[#allocation10_spill] sm:$0xff] %v2845_v61  ;;  %4041 = vst [vmem:[#allocation12_spill] sm:$0xff] %v2857_v1  ;;  %s2475_s20 = smov 123   ;;  %s2476_s21 = smov 122   ;;  %vm709_vm6 = vcmask 91136   ;;  %vm707_vm7 = vcmask 97280  }
  0x22   :  { %2285 = vmatpush1.bf16.msra.mxu0 %v2284_v6  ;;  %s2477_s22 = smov 121   ;;  %s2478_s23 = smov 120   ;;  %vm3519_vm5 = vmpackc.low %vm1112_vm3, %vm2479_vm4  ;;  %vm1108_vm8 = vcmask 1041409   ;;  %vm2210_vm9 = vcmask 1040384   ;;  %vm2211_vm10 = vcmask 582657  }
  0x23   :  { %2287 = vmatprep.subr.bf16.mxu0 %v2286_v8  ;;  %vm2212_vm11 = vmor %vm2211_vm10, %vm2210_vm9 }
  0x25   :  { %476 = vperm.xlu1 %2367, %v2528_v7   ;;  %2378 = vset.pattern.permute.xlu0 %v4012_v30 }
  0x26   :  { %2289 = vmatpush1.bf16.msra.mxu0 %v2288_v16  ;;  %508 = vperm.xlu0 %2378, %v2547_v15  }
  0x27   :  { %2291 = vmatprep.subr.bf16.mxu0 %v2290_v17 }
  0x29   :  { %480 = vperm.xlu1 %2367, %v2572_v24  }
  0x2a   :  { %2293 = vmatpush1.bf16.msra.mxu0 %v2292_v23  ;;  %520 = vperm.xlu0 %2378, %v2572_v24   ;;  %v157_v23 = vunpack.c.0.s8 %v156_v20 }
  0x2b   :  { %2295 = vmatprep.subr.bf16.mxu0 %v2294_v25 }
  0x2c   :  { %v2902_v25 = vsub.s32 %v157_v23, %v2595_v40 }
  0x2d   :  { %2368 = vset.pattern.permute.xlu1 %v4012_v30 }
  0x2e   :  { %2297 = vmatpush1.bf16.msra.mxu0 %v2296_v31  ;;  %512 = vperm.xlu1 %2368, %v2510_v0   ;;  %4048 = vst [vmem:[#allocation19_spill] sm:$0xff] %v2902_v25 }
  0x2f   :  { %2299 = vmatprep.subr.bf16.mxu0 %v2298_v33  ;;  %886 = vperm.xlu0 %2378, %v2624_v52  }
  0x32   :  { %2301 = vmatpush1.bf16.msra.mxu0 %v2300_v36  ;;  %516 = vperm.xlu1 %2368, %v2528_v7  }
  0x33   :  { %131 = vmatprep.subr.mxu0 %v69_v37  ;;  %2380 = vset.pattern.permute.xlu0 %v4008_v39 }
  0x34   :  { %552 = vperm.xlu0 %2380, %v2510_v0  }
  0x36   :  { %132 = vmatpush1.msra.mxu0 %v68_v38  ;;  %2369 = vset.pattern.permute.xlu1 %v4008_v39 }
  0x37   :  { %148 = vmatmul.mubr.f32.vlgmr.msra.gmra.mrb[0].mxu0 %v2633_v57  ;;  %548 = vperm.xlu1 %2369, %v2547_v15  }
  0x38   :  { %922 = vperm.xlu0 %2380, %v2675_v14  }
  0x3b   :  { %556 = vperm.xlu1 %2369, %v2528_v7  }
  0x3c   :  { %934 = vperm.xlu0 %2380, %v2695_v22  }
  0x3f   :  { %560 = vperm.xlu1 %2369, %v2572_v24  }
  0x40   :  { %2382 = vset.pattern.permute.xlu0 %v4016_v41 }
  0x41   :  { %588 = vperm.xlu0 %2382, %v2547_v15  }
  0x43   :  { %2370 = vset.pattern.permute.xlu1 %v4016_v41 }
  0x44   :  { %592 = vperm.xlu1 %2370, %v2510_v0  }
  0x45   :  { %600 = vperm.xlu0 %2382, %v2572_v24  }
  0x48   :  { %596 = vperm.xlu1 %2370, %v2528_v7  }
  0x49   :  { %966 = vperm.xlu0 %2382, %v2624_v52  }
  0x4c   :  { %2371 = vset.pattern.permute.xlu1 %v4010_v42 }
  0x4d   :  { %628 = vperm.xlu1 %2371, %v2547_v15   ;;  %2384 = vset.pattern.permute.xlu0 %v4010_v42 }
  0x4e   :  { %632 = vperm.xlu0 %2384, %v2510_v0  }
  0x51   :  { %636 = vperm.xlu1 %2371, %v2528_v7  }
  0x52   :  { %1002 = vperm.xlu0 %2384, %v2675_v14  }
  0x55   :  { %640 = vperm.xlu1 %2371, %v2572_v24  }
  0x56   :  { %1014 = vperm.xlu0 %2384, %v2695_v22  }
  0x59   :  { %2372 = vset.pattern.permute.xlu1 %v4006_v43 }
  0x5a   :  { %672 = vperm.xlu1 %2372, %v2510_v0   ;;  %2386 = vset.pattern.permute.xlu0 %v4006_v43 }
  0x5b   :  { %668 = vperm.xlu0 %2386, %v2547_v15  }
  0x5e   :  { %676 = vperm.xlu1 %2372, %v2528_v7   ;;  %v2777_v7 = vld [vmem:[%s4000_s1 + $0x28] sm:$0x3] }
  0x5f   :  { %680 = vperm.xlu0 %2386, %v2572_v24   ;;  %4035 = vst [vmem:[#allocation6_spill] sm:$0xff] %v2777_v7 }
  0x62   :  { %2373 = vset.pattern.permute.xlu1 %v4004_v3 }
  0x63   :  { %735 = vperm.xlu1 %2373, %v2675_v14   ;;  %1046 = vperm.xlu0 %2386, %v2624_v52  }
  0x67   :  { %745 = vperm.xlu1 %2373, %v353_v44   ;;  %2388 = vset.pattern.permute.xlu0 %v4020_v32 }
  0x68   :  { %392 = vperm.xlu0 %2388, %v2510_v0  }
  0x6b   :  { %750 = vperm.xlu1 %2373, %v2695_v22  }
  0x6c   :  { %762 = vperm.xlu0 %2388, %v2675_v14  }
  0x6f   :  { %2374 = vset.pattern.permute.xlu1 %v4020_v32 }
  0x70   :  { %766 = vperm.xlu1 %2374, %v2624_v52   ;;  %774 = vperm.xlu0 %2388, %v2695_v22  }
  0x74   :  { %770 = vperm.xlu1 %2374, %v353_v44   ;;  %1305 = vperm.xlu0 %2388, %v2777_v7  }
  0x78   :  { %2375 = vset.pattern.permute.xlu1 %v4018_v12 }
  0x79   :  { %802 = vperm.xlu1 %2375, %v2675_v14  }
  0x7d   :  { %810 = vperm.xlu1 %2375, %v353_v44  }
  0x81   :  { %814 = vperm.xlu1 %2375, %v2695_v22   ;;  %v2783_v0 = vpop.permute.xlu1 %366 }
  0x82   :  { %4036 = vst [vmem:[#allocation7_spill] sm:$0xff] %v2783_v0 }
  0x84   :  { %v2876_v10 = vpop.permute.xlu0 %428 }
  0x85   :  { %2377 = vset.pattern.permute.xlu1 %v4014_v5  ;;  %v2786_v15 = vpop.permute.xlu1 %371 }
  0x86   :  { %4037 = vst [vmem:[#allocation8_spill] sm:$0xff] %v2786_v15  ;;  %846 = vperm.xlu1 %2377, %v2624_v52  }
  0x8a   :  { %850 = vperm.xlu1 %2377, %v353_v44   ;;  %v2789_v24 = vpop.permute.xlu1 %388 }
  0x8e   :  { %2379 = vset.pattern.permute.xlu1 %v4012_v30  ;;  %v2792_v45 = vpop.permute.xlu1 %396 }
  0x8f   :  { %882 = vperm.xlu1 %2379, %v2675_v14  }
  0x92   :  { %v2795_v46 = vpop.permute.xlu1 %400 }
  0x93   :  { %890 = vperm.xlu1 %2379, %v353_v44  }
  0x97   :  { %894 = vperm.xlu1 %2379, %v2695_v22   ;;  %v2798_v47 = vpop.permute.xlu1 %432 }
  0x9b   :  { %2381 = vset.pattern.permute.xlu1 %v4008_v39  ;;  %v2801_v48 = vpop.permute.xlu1 %436 }
  0x9c   :  { %926 = vperm.xlu1 %2381, %v2624_v52  }
  0xa0   :  { %930 = vperm.xlu1 %2381, %v353_v44   ;;  %v2804_v49 = vpop.permute.xlu1 %468 }
  0xa4   :  { %2383 = vset.pattern.permute.xlu1 %v4016_v41  ;;  %v2807_v50 = vpop.permute.xlu1 %476 }
  0xa5   :  { %962 = vperm.xlu1 %2383, %v2675_v14  }
  0xa8   :  { %v2810_v51 = vpop.permute.xlu1 %480 }
  0xa9   :  { %970 = vperm.xlu1 %2383, %v353_v44  }
  0xad   :  { %974 = vperm.xlu1 %2383, %v2695_v22   ;;  %v2813_v53 = vpop.permute.xlu1 %512 }
  0xb1   :  { %2385 = vset.pattern.permute.xlu1 %v4010_v42  ;;  %v2816_v54 = vpop.permute.xlu1 %516 }
  0xb2   :  { %1006 = vperm.xlu1 %2385, %v2624_v52   ;;  %v2837_v52 = vld [vmem:[%s4000_s1 + $0x60] sm:$0xff] }
  0xb3   :  { %4038 = vst [vmem:[#allocation9_spill] sm:$0xff] %v2837_v52 }
  0xb6   :  { %1010 = vperm.xlu1 %2385, %v353_v44   ;;  %v2819_v55 = vpop.permute.xlu1 %548 }
  0xba   :  { %2387 = vset.pattern.permute.xlu1 %v4006_v43  ;;  %v2822_v56 = vpop.permute.xlu1 %556 }
  0xbb   :  { %1042 = vperm.xlu1 %2387, %v2675_v14   ;;  %v2884_v14 = vpop.permute.xlu0 %440 }
  0xbe   :  { %v2825_v57 = vpop.permute.xlu1 %560 }
  0xbf   :  { %1050 = vperm.xlu1 %2387, %v353_v44   ;;  %v2890_v17 = vpop.permute.xlu0 %806 }
  0xc3   :  { %1054 = vperm.xlu1 %2387, %v2695_v22   ;;  %v2828_v58 = vpop.permute.xlu1 %592  ;;  %v2896_v21 = vpop.permute.xlu0 %472 }
  0xc7   :  { %2389 = vset.pattern.permute.xlu1 %v4004_v3  ;;  %v2831_v59 = vpop.permute.xlu1 %596  ;;  %v2906_v27 = vpop.permute.xlu0 %842 }
  0xc8   :  { %1279 = vperm.xlu1 %2389, %v2777_v7  }
  0xcb   :  { %v2915_v38 = vpop.permute.xlu0 %854 }
  0xcc   :  { %1284 = vperm.xlu1 %2389, %v2837_v52   ;;  %v2840_v60 = vpop.permute.xlu1 %628 }
  0xd0   :  { %2390 = vset.pattern.permute.xlu1 %v4020_v32  ;;  %v2848_v62 = vpop.permute.xlu1 %636 }
  0xd1   :  { %4040 = vst [vmem:[#allocation11_spill] sm:$0xff] %v2848_v62  ;;  %1301 = vperm.xlu1 %2390, %v2845_v61  }
  0xd4   :  { %v2852_v63 = vpop.permute.xlu1 %640 }
  0xd5   :  { %1309 = vperm.xlu1 %2390, %v2837_v52  }
  0xd9   :  { %1313 = vperm.xlu1 %2390, %v2857_v1   ;;  %v2860_v2 = vpop.permute.xlu1 %672 }
  0xdd   :  { %2391 = vset.pattern.permute.xlu1 %v4018_v12  ;;  %v2863_v4 = vpop.permute.xlu1 %676 }
  0xde   :  { %4042 = vst [vmem:[#allocation13_spill] sm:$0xff] %v2863_v4  ;;  %1345 = vperm.xlu1 %2391, %v2777_v7  }
  0xe2   :  { %1349 = vperm.xlu1 %2391, %v2837_v52   ;;  %v2867_v6 = vpop.permute.xlu1 %735 }
  0xe3   :  { %4043 = vst [vmem:[#allocation14_spill] sm:$0xff] %v2867_v6 }
  0xe6   :  { %2392 = vset.pattern.permute.xlu1 %v4014_v5  ;;  %v2870_v8 = vpop.permute.xlu1 %745 }
  0xe7   :  { %4044 = vst [vmem:[#allocation15_spill] sm:$0xff] %v2870_v8  ;;  %1381 = vperm.xlu1 %2392, %v2845_v61  }
  0xea   :  { %v2873_v9 = vpop.permute.xlu1 %750 }
  0xeb   :  { %4045 = vst [vmem:[#allocation16_spill] sm:$0xff] %v2873_v9  ;;  %1389 = vperm.xlu1 %2392, %v2837_v52  }
  0xef   :  { %1393 = vperm.xlu1 %2392, %v2857_v1   ;;  %v2879_v11 = vpop.permute.xlu1 %766 }
  0xf3   :  { %2393 = vset.pattern.permute.xlu1 %v4012_v30  ;;  %v2882_v13 = vpop.permute.xlu1 %770 }
  0xf4   :  { %4046 = vst [vmem:[#allocation17_spill] sm:$0xff] %v2882_v13  ;;  %1425 = vperm.xlu1 %2393, %v2777_v7  }
  0xf8   :  { %1429 = vperm.xlu1 %2393, %v2837_v52   ;;  %v2888_v16 = vpop.permute.xlu1 %802 }
  0xfc   :  { %2394 = vset.pattern.permute.xlu1 %v4008_v39  ;;  %v2893_v18 = vpop.permute.xlu1 %810 }
  0xfd   :  { %4047 = vst [vmem:[#allocation18_spill] sm:$0xff] %v2893_v18  ;;  %1461 = vperm.xlu1 %2394, %v2845_v61  }
 0x100   :  { %v2898_v22 = vpop.permute.xlu1 %814 }
 0x101   :  { %1469 = vperm.xlu1 %2394, %v2837_v52  }
 0x105   :  { %v2904_v26 = vpop.permute.xlu1 %846 }
 0x109   :  { %v2912_v34 = vpop.permute.xlu1 %850 }
 0x10a   :  { %v149_v28 = vpop.f32.mrb[0].mxu0  ;;  %4049 = vst [vmem:[#allocation20_spill] sm:$0xff] %v2912_v34 }
 0x10b   :  { %v161_v31 = vrot.slane %v149_v28, %v2902_v25  ;;  %v151_v33 = vpop.f32.mrb[1].mxu0 }
 0x10c   :  { %v231_v35 = vcombine.low %v149_v28, %v151_v33  ;;  %v2925_v28 = vpop.permute.xlu0 %508 }
 0x10d   :  { %v162_v36 = vcombine.high %v161_v31, %v161_v31  ;;  %v169_v37 = vrot.slane %v161_v31, %v2902_v25 }
 0x10e   :  { %v2920_v20 = vpop.permute.xlu1 %882  ;;  %v238_v43 = vrot.slane %v231_v35, %v2902_v25 }
 0x10f   :  { %v176_v44 = vrot.slane %v162_v36, %v2902_v25  ;;  %180 = vst.msk [vmem:[#allocation2] sm:$0x1] %vm179_vm1, %v169_v37  ;;  %v185_v19 = vrot.slane %v169_v37, %v2909_v29  ;;  %v291_v36 = vrot.slane %v151_v33, %v2902_v25  ;;  %v260_v33 = vsub.s32 1, %v2595_v40 }
 0x110   :  { %v2932_v3 = vpop.permute.xlu0 %520  ;;  %v246_v42 = vrot.slane %v238_v43, %v2902_v25  ;;  %v239_v6 = vcombine.high %v238_v43, %v238_v43 }
 0x111   :  { %181 = vst.msk [vmem:[#allocation2 + $0x10] sm:$0x1] %vm179_vm1, %v176_v44  ;;  %198 = vrot.lane.b32.xlu1 %v185_v19, %s2462_s7  ;;  %190 = vrot.lane.b32.xlu0 %v185_v19, %s2463_s8  ;;  %v189_v23 = vrot.slane %v176_v44, %v2909_v29  ;;  %v299_v44 = vrot.slane %v291_v36, %v2902_v25 }
 0x112   :  { %v2927_v31 = vpop.permute.xlu1 %890  ;;  %v292_v30 = vcombine.high %v291_v36, %v291_v36  ;;  %v261_v12 = vrot.slane %v246_v42, %v260_v33  ;;  %v257_v0 = vrot.slane %v246_v42, %v2909_v29 }
 0x113   :  { %4050 = vst [vmem:[#allocation21_spill] sm:$0xff] %v2927_v31  ;;  %v310_v5 = vrot.slane %v299_v44, %v2909_v29 }
 0x114   :  { %v2941_v41 = vpop.permute.xlu0 %886 }
 0x115   :  { %206 = vrot.lane.b32.xlu0 %v185_v19, %s2464_s9  ;;  %200 = vrot.lane.b32.xlu1 %v189_v23, %s2462_s7 }
 0x116   :  { %v2930_v37 = vpop.permute.xlu1 %894 }
 0x118   :  { %v2946_v32 = vpop.permute.xlu0 %552 }
 0x119   :  { %214 = vrot.lane.b32.xlu0 %v185_v19, %s2465_s10  ;;  %208 = vrot.lane.b32.xlu1 %v189_v23, %s2464_s9 }
 0x11b   :  { %v2936_v39 = vpop.permute.xlu1 %926 }
 0x11c   :  { %v2953_v15 = vpop.permute.xlu0 %922 }
 0x11d   :  { %222 = vrot.lane.b32.xlu0 %v185_v19, %s2466_s11  ;;  %216 = vrot.lane.b32.xlu1 %v189_v23, %s2465_s10  ;;  %v306_v19 = vrot.slane %v292_v30, %v2902_v25 }
 0x11f   :  { %v2943_v35 = vpop.permute.xlu1 %930  ;;  %v314_v36 = vrot.slane %v306_v19, %v2909_v29 }
 0x120   :  { %4051 = vst [vmem:[#allocation22_spill] sm:$0xff] %v2943_v35  ;;  %v2960_v19 = vpop.permute.xlu0 %934 }
 0x121   :  { %224 = vrot.lane.b32.xlu1 %v189_v23, %s2466_s11  ;;  %315 = vrot.lane.b32.xlu0 %v310_v5, %s2467_s12 }
 0x124   :  { %v2948_v40 = vpop.permute.xlu1 %962 }
 0x125   :  { %323 = vrot.lane.b32.xlu0 %v310_v5, %s2468_s13  ;;  %272 = vrot.lane.b32.xlu1 %v261_v12, %s2469_s14  ;;  %v253_v12 = vrot.slane %v239_v6, %v2902_v25 }
 0x127   :  { %v265_v8 = vrot.slane %v253_v12, %v2909_v29 }
 0x128   :  { %v2951_v44 = vpop.permute.xlu1 %970 }
 0x129   :  { %331 = vrot.lane.b32.xlu0 %v310_v5, %s2470_s15  ;;  %317 = vrot.lane.b32.xlu1 %v314_v36, %s2467_s12  ;;  %4052 = vst [vmem:[#allocation23_spill] sm:$0xff] %v2951_v44  ;;  %v269_v5 = vrot.slane %v253_v12, %v260_v33 }
 0x12c   :  { %v2956_v30 = vpop.permute.xlu1 %974 }
 0x12d   :  { %192 = vrot.lane.b32.xlu0 %v189_v23, %s2463_s8  ;;  %325 = vrot.lane.b32.xlu1 %v314_v36, %s2468_s13  ;;  %v2967_v23 = vpop.permute.xlu0 %588 }
 0x131   :  { %333 = vrot.lane.b32.xlu1 %v314_v36, %s2470_s15  ;;  %270 = vrot.lane.b32.xlu0 %v257_v0, %s2469_s14  ;;  %v2963_v9 = vpop.permute.xlu1 %1006  ;;  %v2971_v6 = vpop.permute.xlu0 %600 }
 0x135   :  { %276 = vrot.lane.b32.xlu1 %v269_v5, %s2469_s14  ;;  %274 = vrot.lane.b32.xlu0 %v265_v8, %s2469_s14  ;;  %v2965_v43 = vpop.permute.xlu1 %1010  ;;  %v2975_v0 = vpop.permute.xlu0 %966 }
 0x136   :  { %4053 = vst [vmem:[#allocation24_spill] sm:$0xff] %v2965_v43 }
 0x139   :  { %v2981_v29 = vpop.permute.xlu0 %632 }
 0x13a   :  { %v2969_v7 = vpop.permute.xlu1 %1042 }
 0x13d   :  { %v2985_v8 = vpop.permute.xlu0 %1002 }
 0x13e   :  { %v2973_v42 = vpop.permute.xlu1 %1050 }
 0x13f   :  { %4054 = vst [vmem:[#allocation25_spill] sm:$0xff] %v2973_v42 }
 0x141   :  { %v2989_v25 = vpop.permute.xlu0 %1014 }
 0x142   :  { %v2977_v36 = vpop.permute.xlu1 %1054 }
 0x145   :  { %v2995_v42 = vpop.permute.xlu0 %668 }
 0x147   :  { %v2979_v33 = vpop.permute.xlu1 %1279 }
 0x148   :  { %4055 = vst [vmem:[#allocation26_spill] sm:$0xff] %v2979_v33 }
 0x149   :  { %v2999_v43 = vpop.permute.xlu0 %680 }
 0x14b   :  { %v2983_v12 = vpop.permute.xlu1 %1284 }
 0x14c   :  { %4056 = vst [vmem:[#allocation27_spill] sm:$0xff] %v2983_v12 }
 0x14d   :  { %v3003_v44 = vpop.permute.xlu0 %1046 }
 0x150   :  { %v2987_v5 = vpop.permute.xlu1 %1301 }
 0x151   :  { %4057 = vst [vmem:[#allocation28_spill] sm:$0xff] %v2987_v5  ;;  %v393_v5 = vpop.permute.xlu0 %392 }
 0x154   :  { %v2991_v52 = vpop.permute.xlu1 %1309 }
 0x155   :  { %4058 = vst [vmem:[#allocation29_spill] sm:$0xff] %v2991_v52  ;;  %v3011_v52 = vpop.permute.xlu0 %762 }
 0x158   :  { %v2993_v61 = vpop.permute.xlu1 %1313 }
 0x159   :  { %4059 = vst [vmem:[#allocation30_spill] sm:$0xff] %v2993_v61  ;;  %v3015_v34 = vpop.permute.xlu0 %774 }
 0x15d   :  { %v2997_v1 = vpop.permute.xlu1 %1345 }
 0x15e   :  { %4060 = vst [vmem:[#allocation31_spill] sm:$0xff] %v2997_v1 }
 0x161   :  { %v3001_v33 = vpop.permute.xlu1 %1349 }
 0x162   :  { %4061 = vst [vmem:[#allocation32_spill] sm:$0xff] %v3001_v33  ;;  %v3021_v33 = vpop.permute.xlu0 %1305 }
 0x163   :  { %4068 = vst [vmem:[#allocation39_spill] sm:$0xff] %v3021_v33 }
 0x166   :  { %v3005_v12 = vpop.permute.xlu1 %1381 }
 0x167   :  { %4062 = vst [vmem:[#allocation33_spill] sm:$0xff] %v3005_v12 }
 0x16a   :  { %v3007_v35 = vpop.permute.xlu1 %1389 }
 0x16b   :  { %4063 = vst [vmem:[#allocation34_spill] sm:$0xff] %v3007_v35 }
 0x16e   :  { %v3009_v31 = vpop.permute.xlu1 %1393 }
 0x16f   :  { %4064 = vst [vmem:[#allocation35_spill] sm:$0xff] %v3009_v31 }
 0x173   :  { %v3013_v61 = vpop.permute.xlu1 %1425 }
 0x174   :  { %4065 = vst [vmem:[#allocation36_spill] sm:$0xff] %v3013_v61 }
 0x177   :  { %v3017_v1 = vpop.permute.xlu1 %1429 }
 0x178   :  { %4066 = vst [vmem:[#allocation37_spill] sm:$0xff] %v3017_v1 }
 0x17c   :  { %v3019_v18 = vpop.permute.xlu1 %1461 }
 0x17d   :  { %4067 = vst [vmem:[#allocation38_spill] sm:$0xff] %v3019_v18 }
 0x180   :  { %v3023_v13 = vpop.permute.xlu1 %1469 }
 0x181   :  { %4069 = vst [vmem:[#allocation40_spill] sm:$0xff] %v3023_v13 }
 0x183   :  { %v191_v12 = vpop.permute.xlu0 %190 }
 0x184   :  { %196 = vst.msk [vmem:[#allocation2 + $0x1] sm:$0x1] %vm179_vm1, %v191_v12  ;;  %v199_v35 = vpop.permute.xlu1 %198 }
 0x185   :  { %204 = vst.msk [vmem:[#allocation2 + $0x2] sm:$0x1] %vm179_vm1, %v199_v35 }
 0x187   :  { %v207_v31 = vpop.permute.xlu0 %206 }
 0x188   :  { %212 = vst.msk [vmem:[#allocation2 + $0x3] sm:$0x1] %vm179_vm1, %v207_v31  ;;  %v201_v61 = vpop.permute.xlu1 %200 }
 0x189   :  { %205 = vst.msk [vmem:[#allocation2 + $0x12] sm:$0x1] %vm179_vm1, %v201_v61 }
 0x18b   :  { %v215_v62 = vpop.permute.xlu0 %214 }
 0x18c   :  { %220 = vst.msk [vmem:[#allocation2 + $0x4] sm:$0x1] %vm179_vm1, %v215_v62  ;;  %v209_v18 = vpop.permute.xlu1 %208 }
 0x18d   :  { %213 = vst.msk [vmem:[#allocation2 + $0x13] sm:$0x1] %vm179_vm1, %v209_v18 }
 0x18f   :  { %v223_v1 = vpop.permute.xlu0 %222 }
 0x190   :  { %228 = vst.msk [vmem:[#allocation2 + $0x5] sm:$0x1] %vm179_vm1, %v223_v1  ;;  %v217_v13 = vpop.permute.xlu1 %216 }
 0x191   :  { %221 = vst.msk [vmem:[#allocation2 + $0x14] sm:$0x1] %vm179_vm1, %v217_v13 }
 0x193   :  { %v316_v12 = vpop.permute.xlu0 %315 }
 0x194   :  { %321 = vst.msk [vmem:[#allocation2 + $0x7] sm:$0x1] %vm179_vm1, %v316_v12  ;;  %v225_v35 = vpop.permute.xlu1 %224 }
 0x195   :  { %229 = vst.msk [vmem:[#allocation2 + $0x15] sm:$0x1] %vm179_vm1, %v225_v35 }
 0x197   :  { %v324_v31 = vpop.permute.xlu0 %323 }
 0x198   :  { %329 = vst.msk [vmem:[#allocation2 + $0x8] sm:$0x1] %vm179_vm1, %v324_v31  ;;  %v273_v61 = vpop.permute.xlu1 %272 }
 0x19b   :  { %v332_v62 = vpop.permute.xlu0 %331 }
 0x19c   :  { %337 = vst.msk [vmem:[#allocation2 + $0x9] sm:$0x1] %vm179_vm1, %v332_v62  ;;  %v318_v18 = vpop.permute.xlu1 %317 }
 0x19d   :  { %322 = vst.msk [vmem:[#allocation2 + $0x17] sm:$0x1] %vm179_vm1, %v318_v18 }
 0x19f   :  { %v193_v1 = vpop.permute.xlu0 %192 }
 0x1a0   :  { %197 = vst.msk [vmem:[#allocation2 + $0x11] sm:$0x1] %vm179_vm1, %v193_v1  ;;  %v326_v13 = vpop.permute.xlu1 %325 }
 0x1a1   :  { %330 = vst.msk [vmem:[#allocation2 + $0x18] sm:$0x1] %vm179_vm1, %v326_v13 }
 0x1a3   :  { %v3039_v33 = vld [vmem:[#allocation2 + $0x8] sm:$0x3]  ;;  %v271_v31 = vpop.permute.xlu0 %270 }
 0x1a4   :  { %v404_v12 = vmul.f32 %v393_v5, %v3039_v33  ;;  %v444_v35 = vmul.f32 %v2798_v47, %v3039_v33  ;;  %v334_v4 = vpop.permute.xlu1 %333  ;;  %v484_v62 = vmul.f32 %v2896_v21, %v3039_v33  ;;  %v524_v5 = vmul.f32 %v2813_v53, %v3039_v33 }
 0x1a5   :  { %338 = vst.msk [vmem:[#allocation2 + $0x19] sm:$0x1] %vm179_vm1, %v334_v4  ;;  %v279_v18 = vsel %vm278_vm2, %v271_v31, %v273_v61  ;;  %v564_v4 = vmul.f32 %v2946_v32, %v3039_v33  ;;  %v604_v53 = vmul.f32 %v2828_v58, %v3039_v33  ;;  %v644_v21 = vmul.f32 %v2981_v29, %v3039_v33 }
 0x1a6   :  { %413 = vrot.lane.b32.xlu1 %v404_v12, %s2471_s16  ;;  %453 = vrot.lane.b32.xlu0 %v444_v35, %s2472_s17  ;;  %283 = vst.msk [vmem:[#allocation2 + $0x6] sm:$0x1] %vm179_vm1, %v279_v18  ;;  %v684_v61 = vmul.f32 %v2860_v2, %v3039_v33  ;;  %v818_v32 = vmul.f32 %v2890_v17, %v3039_v33  ;;  %v4072_v18 = vld [vmem:[#allocation17_spill] sm:$0xff] }
 0x1a7   :  { %v275_v47 = vpop.permute.xlu0 %274  ;;  %v778_v58 = vmul.f32 %v2879_v11, %v3039_v33  ;;  %v898_v29 = vmul.f32 %v2941_v41, %v3039_v33  ;;  %v858_v2 = vmul.f32 %v2904_v26, %v3039_v33  ;;  %v978_v17 = vmul.f32 %v2975_v0, %v3039_v33 }
 0x1a8   :  { %v277_v1 = vpop.permute.xlu1 %276  ;;  %v938_v11 = vmul.f32 %v2936_v39, %v3039_v33  ;;  %v1058_v41 = vmul.f32 %v3003_v44, %v3039_v33  ;;  %v1018_v26 = vmul.f32 %v2963_v9, %v3039_v33 }
 0x1a9   :  { %v280_v13 = vsel %vm278_vm2, %v275_v47, %v277_v1  ;;  %v4073_v47 = vld [vmem:[#allocation18_spill] sm:$0xff]  ;;  %v4074_v1 = vld [vmem:[#allocation20_spill] sm:$0xff] }
 0x1aa   :  { %493 = vrot.lane.b32.xlu1 %v484_v62, %s2473_s18  ;;  %533 = vrot.lane.b32.xlu0 %v524_v5, %s2474_s19  ;;  %284 = vst.msk [vmem:[#allocation2 + $0x16] sm:$0x1] %vm179_vm1, %v280_v13  ;;  %v4070_v62 = vld [vmem:[#allocation13_spill] sm:$0xff]  ;;  %v4071_v5 = vld [vmem:[#allocation11_spill] sm:$0xff] }
 0x1ac   :  { %v3090_v12 = vld [vmem:[#allocation2 + $0x18] sm:$0x3] }
 0x1ad   :  { %v406_v0 = vmul.f32 %v2795_v46, %v3090_v12  ;;  %v446_v39 = vmul.f32 %v2884_v14, %v3090_v12  ;;  %v486_v44 = vmul.f32 %v2810_v51, %v3090_v12  ;;  %v526_v9 = vmul.f32 %v2932_v3, %v3090_v12  ;;  %v3138_v35 = vld [vmem:[#allocation2] sm:$0xff] }
 0x1ae   :  { %573 = vrot.lane.b32.xlu1 %v564_v4, %s2475_s20  ;;  %613 = vrot.lane.b32.xlu0 %v604_v53, %s2476_s21  ;;  %v566_v46 = vmul.f32 %v2825_v57, %v3090_v12  ;;  %v606_v14 = vmul.f32 %v2971_v6, %v3090_v12  ;;  %v646_v51 = vmul.f32 %v2852_v63, %v3090_v12  ;;  %v4075_v53 = vld [vmem:[#allocation21_spill] sm:$0xff] }
 0x1af   :  { %v686_v3 = vmul.f32 %v2999_v43, %v3090_v12  ;;  %v820_v57 = vmul.f32 %v2898_v22, %v3090_v12  ;;  %v780_v6 = vmul.f32 %v3015_v34, %v3090_v12  ;;  %v900_v63 = vmul.f32 %v2930_v37, %v3090_v12 }
 0x1b0   :  { %v860_v43 = vmul.f32 %v2915_v38, %v3090_v12  ;;  %v980_v22 = vmul.f32 %v2956_v30, %v3090_v12  ;;  %v940_v34 = vmul.f32 %v2960_v19, %v3090_v12  ;;  %v1060_v37 = vmul.f32 %v2977_v36, %v3090_v12 }
 0x1b1   :  { %v1020_v38 = vmul.f32 %v2989_v25, %v3090_v12  ;;  %v443_v30 = vmul.f32 %v2876_v10, %v3138_v35  ;;  %v403_v19 = vmul.f32 %v2789_v24, %v3138_v35  ;;  %v523_v36 = vmul.f32 %v2925_v28, %v3138_v35  ;;  %v3190_v31 = vld [vmem:[#allocation2 + $0x10] sm:$0xff] }
 0x1b2   :  { %653 = vrot.lane.b32.xlu1 %v644_v21, %s2477_s22  ;;  %693 = vrot.lane.b32.xlu0 %v684_v61, %s2478_s23  ;;  %v483_v25 = vmul.f32 %v2804_v49, %v3138_v35  ;;  %v603_v10 = vmul.f32 %v2967_v23, %v3138_v35  ;;  %v563_v24 = vmul.f32 %v2819_v55, %v3138_v35 }
 0x1b3   :  { %v683_v28 = vmul.f32 %v2995_v42, %v3138_v35  ;;  %v643_v49 = vmul.f32 %v2840_v60, %v3138_v35  ;;  %v777_v23 = vmul.f32 %v3011_v52, %v3138_v35  ;;  %v817_v55 = vmul.f32 %v2888_v16, %v3138_v35 }
 0x1b4   :  { %v857_v42 = vmul.f32 %v2906_v27, %v3138_v35  ;;  %v897_v60 = vmul.f32 %v2920_v20, %v3138_v35  ;;  %v937_v52 = vmul.f32 %v2953_v15, %v3138_v35  ;;  %v977_v16 = vmul.f32 %v2948_v40, %v3138_v35 }
 0x1b5   :  { %v1017_v27 = vmul.f32 %v2985_v8, %v3138_v35  ;;  %v1057_v20 = vmul.f32 %v2969_v7, %v3138_v35  ;;  %v445_v15 = vmul.f32 %v2801_v48, %v3190_v31  ;;  %v405_v40 = vmul.f32 %v2792_v45, %v3190_v31 }
 0x1b6   :  { %827 = vrot.lane.b32.xlu1 %v818_v32, %s2472_s17  ;;  %787 = vrot.lane.b32.xlu0 %v778_v58, %s2471_s16  ;;  %v525_v8 = vmul.f32 %v2816_v54, %v3190_v31  ;;  %v485_v7 = vmul.f32 %v2807_v50, %v3190_v31  ;;  %v605_v48 = vmul.f32 %v2831_v59, %v3190_v31  ;;  %v4076_v32 = vld [vmem:[#allocation22_spill] sm:$0xff] }
 0x1b7   :  { %v565_v45 = vmul.f32 %v2822_v56, %v3190_v31  ;;  %v685_v54 = vmul.f32 %v4070_v62, %v3190_v31  ;;  %v645_v50 = vmul.f32 %v4071_v5, %v3190_v31  ;;  %v779_v59 = vmul.f32 %v4072_v18, %v3190_v31  ;;  %v4108_v62 = vld [vmem:[#allocation25_spill] sm:$0xff] }
 0x1b8   :  { %v819_v56 = vmul.f32 %v4073_v47, %v3190_v31  ;;  %v859_v13 = vmul.f32 %v4074_v1, %v3190_v31  ;;  %v899_v21 = vmul.f32 %v4075_v53, %v3190_v31  ;;  %v939_v58 = vmul.f32 %v4076_v32, %v3190_v31 }
 0x1b9   :  { %v4111_v53 = vmov 5  }
 0x1ba   :  { %907 = vrot.lane.b32.xlu1 %v898_v29, %s2474_s19  ;;  %867 = vrot.lane.b32.xlu0 %v858_v2, %s2473_s18  ;;  %v4077_v2 = vld [vmem:[#allocation23_spill] sm:$0xff] }
 0x1be   :  { %987 = vrot.lane.b32.xlu1 %v978_v17, %s2476_s21  ;;  %947 = vrot.lane.b32.xlu0 %v938_v11, %s2475_s20  ;;  %v979_v17 = vmul.f32 %v4077_v2, %v3190_v31 }
 0x1c2   :  { %1067 = vrot.lane.b32.xlu1 %v1058_v41, %s2478_s23  ;;  %1027 = vrot.lane.b32.xlu0 %v1018_v26, %s2477_s22  ;;  %v4078_v41 = vld [vmem:[#allocation24_spill] sm:$0xff] }
 0x1c3   :  { %v1019_v26 = vmul.f32 %v4078_v41, %v3190_v31 }
 0x1c6   :  { %417 = vrot.lane.b32.xlu1 %v406_v0, %s2471_s16  ;;  %457 = vrot.lane.b32.xlu0 %v446_v39, %s2472_s17  ;;  %v3251_v39 = vld [vmem:[%s4000_s1 + $0x30] sm:$0xff] }
 0x1ca   :  { %497 = vrot.lane.b32.xlu1 %v486_v44, %s2473_s18  ;;  %537 = vrot.lane.b32.xlu0 %v526_v9, %s2474_s19 }
 0x1ce   :  { %577 = vrot.lane.b32.xlu1 %v566_v46, %s2475_s20  ;;  %617 = vrot.lane.b32.xlu0 %v606_v14, %s2476_s21  ;;  %v3262_v46 = vld [vmem:[%s4000_s1 + $0x78] sm:$0x3] }
 0x1d2   :  { %657 = vrot.lane.b32.xlu1 %v646_v51, %s2477_s22  ;;  %697 = vrot.lane.b32.xlu0 %v686_v3, %s2478_s23  ;;  %v4082_v51 = vld [vmem:[#allocation12_spill] sm:$0xff] }
 0x1d6   :  { %831 = vrot.lane.b32.xlu1 %v820_v57, %s2472_s17  ;;  %791 = vrot.lane.b32.xlu0 %v780_v6, %s2471_s16  ;;  %v3273_v57 = vld [vmem:[%s4000_s1 + $0x38] sm:$0x3] }
 0x1da   :  { %911 = vrot.lane.b32.xlu1 %v900_v63, %s2474_s19  ;;  %871 = vrot.lane.b32.xlu0 %v860_v43, %s2473_s18  ;;  %v4085_v63 = vmov 1   ;;  %v4086_v43 = vmov 2  }
 0x1de   :  { %991 = vrot.lane.b32.xlu1 %v980_v22, %s2476_s21  ;;  %951 = vrot.lane.b32.xlu0 %v940_v34, %s2475_s20  ;;  %v4087_v22 = vld [vmem:[#allocation10_spill] sm:$0xff] }
 0x1e2   :  { %1071 = vrot.lane.b32.xlu1 %v1060_v37, %s2478_s23  ;;  %1031 = vrot.lane.b32.xlu0 %v1020_v38, %s2477_s22  ;;  %v3286_v37 = vld [vmem:[%s4000_s1 + $0x70] sm:$0xff] }
 0x1e6   :  { %451 = vrot.lane.b32.xlu1 %v443_v30, %s2472_s17  ;;  %411 = vrot.lane.b32.xlu0 %v403_v19, %s2471_s16 }
 0x1ea   :  { %531 = vrot.lane.b32.xlu1 %v523_v36, %s2474_s19  ;;  %491 = vrot.lane.b32.xlu0 %v483_v25, %s2473_s18  ;;  %v4092_v36 = vmov 6  }
 0x1ee   :  { %611 = vrot.lane.b32.xlu1 %v603_v10, %s2476_s21  ;;  %571 = vrot.lane.b32.xlu0 %v563_v24, %s2475_s20 }
 0x1f2   :  { %691 = vrot.lane.b32.xlu1 %v683_v28, %s2478_s23  ;;  %651 = vrot.lane.b32.xlu0 %v643_v49, %s2477_s22  ;;  %v4096_v28 = vld [vmem:[#allocation9_spill] sm:$0xff] }
 0x1f6   :  { %785 = vrot.lane.b32.xlu1 %v777_v23, %s2471_s16  ;;  %825 = vrot.lane.b32.xlu0 %v817_v55, %s2472_s17  ;;  %v4098_v23 = vmov 3  }
 0x1fa   :  { %865 = vrot.lane.b32.xlu1 %v857_v42, %s2473_s18  ;;  %905 = vrot.lane.b32.xlu0 %v897_v60, %s2474_s19  ;;  %v4100_v42 = vld [vmem:[#allocation6_spill] sm:$0xff] }
 0x1fe   :  { %945 = vrot.lane.b32.xlu1 %v937_v52, %s2475_s20  ;;  %985 = vrot.lane.b32.xlu0 %v977_v16, %s2476_s21 }
 0x202   :  { %1025 = vrot.lane.b32.xlu1 %v1017_v27, %s2477_s22  ;;  %1065 = vrot.lane.b32.xlu0 %v1057_v20, %s2478_s23 }
 0x206   :  { %455 = vrot.lane.b32.xlu1 %v445_v15, %s2472_s17  ;;  %415 = vrot.lane.b32.xlu0 %v405_v40, %s2471_s16  ;;  %v4106_v40 = vmov 4  }
 0x20a   :  { %535 = vrot.lane.b32.xlu1 %v525_v8, %s2474_s19  ;;  %495 = vrot.lane.b32.xlu0 %v485_v7, %s2473_s18  ;;  %v4107_v7 = vmov 7  }
 0x20e   :  { %615 = vrot.lane.b32.xlu1 %v605_v48, %s2476_s21  ;;  %575 = vrot.lane.b32.xlu0 %v565_v45, %s2475_s20 }
 0x212   :  { %695 = vrot.lane.b32.xlu1 %v685_v54, %s2478_s23  ;;  %655 = vrot.lane.b32.xlu0 %v645_v50, %s2477_s22  ;;  %v1059_v54 = vmul.f32 %v4108_v62, %v3190_v31 }
 0x216   :  { %789 = vrot.lane.b32.xlu1 %v779_v59, %s2471_s16  ;;  %829 = vrot.lane.b32.xlu0 %v819_v56, %s2472_s17 }
 0x218   :  { %v3226_v4 = vpop.permute.xlu1 %413  ;;  %v3230_v61 = vpop.permute.xlu0 %453 }
 0x21a   :  { %869 = vrot.lane.b32.xlu1 %v859_v13, %s2473_s18  ;;  %909 = vrot.lane.b32.xlu0 %v899_v21, %s2474_s19  ;;  %v4112_v21 = vmov 8  }
 0x21c   :  { %v3236_v29 = vpop.permute.xlu1 %493  ;;  %v3240_v11 = vpop.permute.xlu0 %533 }
 0x21e   :  { %949 = vrot.lane.b32.xlu1 %v939_v58, %s2475_s20  ;;  %989 = vrot.lane.b32.xlu0 %v979_v17, %s2476_s21 }
 0x220   :  { %v3246_v0 = vpop.permute.xlu1 %573  ;;  %v3253_v44 = vpop.permute.xlu0 %613 }
 0x221   :  { %4079 = vst [vmem:[#allocation13_spill] sm:$0xff] %v3253_v44 }
 0x222   :  { %1029 = vrot.lane.b32.xlu1 %v1019_v26, %s2477_s22  ;;  %1758 = vperm.xlu0 %2388, %v3251_v39  }
 0x224   :  { %v3257_v9 = vpop.permute.xlu1 %653  ;;  %v3264_v14 = vpop.permute.xlu0 %693 }
 0x225   :  { %4080 = vst [vmem:[#allocation11_spill] sm:$0xff] %v3257_v9  ;;  %4081 = vst [vmem:[#allocation17_spill] sm:$0xff] %v3264_v14 }
 0x226   :  { %1473 = vperm.xlu1 %2394, %v4082_v51   ;;  %1770 = vperm.xlu0 %2388, %v3262_v46  }
 0x228   :  { %v3268_v3 = vpop.permute.xlu1 %827  ;;  %v3275_v6 = vpop.permute.xlu0 %787 }
 0x229   :  { %4083 = vst [vmem:[#allocation18_spill] sm:$0xff] %v3268_v3  ;;  %4084 = vst [vmem:[#allocation20_spill] sm:$0xff] %v3275_v6 }
 0x22a   :  { %2395 = vset.pattern.permute.xlu1 %v4085_v63  ;;  %2396 = vset.pattern.permute.xlu0 %v4086_v43 }
 0x22b   :  { %1762 = vperm.xlu1 %2395, %v3273_v57   ;;  %1341 = vperm.xlu0 %2396, %v4087_v22  }
 0x22c   :  { %v3281_v34 = vpop.permute.xlu1 %907  ;;  %v3288_v38 = vpop.permute.xlu0 %867 }
 0x22d   :  { %4088 = vst [vmem:[#allocation21_spill] sm:$0xff] %v3281_v34  ;;  %4089 = vst [vmem:[#allocation22_spill] sm:$0xff] %v3288_v38 }
 0x22f   :  { %1766 = vperm.xlu1 %2395, %v3286_v37   ;;  %1353 = vperm.xlu0 %2396, %v4082_v51  }
 0x230   :  { %v3292_v30 = vpop.permute.xlu1 %987  ;;  %v3294_v19 = vpop.permute.xlu0 %947 }
 0x231   :  { %4090 = vst [vmem:[#allocation23_spill] sm:$0xff] %v3292_v30  ;;  %4091 = vst [vmem:[#allocation24_spill] sm:$0xff] %v3294_v19  ;;  %v2420_v19 = vld [vmem:[%s4000_s1] sm:$0xff] }
 0x233   :  { %2397 = vset.pattern.permute.xlu1 %v4092_v36  ;;  %1798 = vperm.xlu0 %2396, %v3251_v39  }
 0x234   :  { %v3298_v25 = vpop.permute.xlu1 %1067  ;;  %1501 = vperm.xlu1 %2397, %v4087_v22   ;;  %v3301_v10 = vpop.permute.xlu0 %1027 }
 0x235   :  { %4093 = vst [vmem:[#allocation12_spill] sm:$0xff] %v3298_v25  ;;  %4094 = vst [vmem:[#allocation10_spill] sm:$0xff] %v3301_v10 }
 0x237   :  { %1810 = vperm.xlu0 %2396, %v3262_v46  }
 0x238   :  { %v3304_v24 = vpop.permute.xlu1 %417  ;;  %1509 = vperm.xlu1 %2397, %v4096_v28   ;;  %v3307_v49 = vpop.permute.xlu0 %457 }
 0x239   :  { %4095 = vst [vmem:[#allocation41_spill] sm:$0xff] %v3304_v24  ;;  %4097 = vst [vmem:[#allocation9_spill] sm:$0xff] %v3307_v49  ;;  %v4139_v49 = vld [vmem:[#allocation38_spill] sm:$0xff] }
 0x23b   :  { %2399 = vset.pattern.permute.xlu0 %v4098_v23 }
 0x23c   :  { %v3310_v55 = vpop.permute.xlu1 %497  ;;  %1513 = vperm.xlu1 %2397, %v4082_v51   ;;  %1385 = vperm.xlu0 %2399, %v4100_v42   ;;  %v3314_v60 = vpop.permute.xlu0 %537 }
 0x23d   :  { %4099 = vst [vmem:[#allocation42_spill] sm:$0xff] %v3310_v55  ;;  %4101 = vst [vmem:[#allocation6_spill] sm:$0xff] %v3314_v60  ;;  %v4132_v60 = vmov 0 }
 0x23e   :  { %v4133_v60 = vsel %vm3519_vm5, 4294967295, %v4132_v60 }
 0x240   :  { %v3316_v52 = vpop.permute.xlu1 %577  ;;  %2398 = vset.pattern.permute.xlu1 %v4086_v43  ;;  %1838 = vperm.xlu0 %2399, %v3251_v39   ;;  %v3320_v16 = vpop.permute.xlu0 %617 }
 0x241   :  { %4102 = vst [vmem:[#allocation43_spill] sm:$0xff] %v3316_v52  ;;  %4103 = vst [vmem:[#allocation44_spill] sm:$0xff] %v3320_v16  ;;  %1802 = vperm.xlu1 %2398, %v3273_v57  }
 0x244   :  { %v3323_v27 = vpop.permute.xlu1 %657  ;;  %1850 = vperm.xlu0 %2399, %v3262_v46   ;;  %v3326_v20 = vpop.permute.xlu0 %697 }
 0x245   :  { %4104 = vst [vmem:[#allocation45_spill] sm:$0xff] %v3323_v27  ;;  %4105 = vst [vmem:[#allocation46_spill] sm:$0xff] %v3326_v20  ;;  %1806 = vperm.xlu1 %2398, %v3286_v37  }
 0x248   :  { %v3329_v15 = vpop.permute.xlu1 %831  ;;  %2402 = vset.pattern.permute.xlu0 %v4106_v40  ;;  %v3332_v8 = vpop.permute.xlu0 %791 }
 0x249   :  { %2400 = vset.pattern.permute.xlu1 %v4107_v7  ;;  %1421 = vperm.xlu0 %2402, %v4087_v22  }
 0x24a   :  { %1541 = vperm.xlu1 %2400, %v4087_v22  }
 0x24c   :  { %v3337_v48 = vpop.permute.xlu1 %911  ;;  %v3339_v45 = vpop.permute.xlu0 %871 }
 0x24d   :  { %1433 = vperm.xlu0 %2402, %v4082_v51  }
 0x24e   :  { %1549 = vperm.xlu1 %2400, %v4096_v28  }
 0x250   :  { %v3345_v5 = vpop.permute.xlu1 %991  ;;  %v3347_v50 = vpop.permute.xlu0 %951 }
 0x251   :  { %1069 = vrot.lane.b32.xlu0 %v1059_v54, %s2478_s23 }
 0x252   :  { %1553 = vperm.xlu1 %2400, %v4082_v51  }
 0x254   :  { %v3351_v18 = vpop.permute.xlu1 %1071  ;;  %v3353_v59 = vpop.permute.xlu0 %1031 }
 0x255   :  { %4109 = vst [vmem:[#allocation25_spill] sm:$0xff] %v3351_v18  ;;  %1878 = vperm.xlu0 %2402, %v3251_v39  }
 0x256   :  { %2401 = vset.pattern.permute.xlu1 %v4098_v23 }
 0x257   :  { %1842 = vperm.xlu1 %2401, %v3273_v57  }
 0x258   :  { %v3358_v47 = vpop.permute.xlu1 %451  ;;  %v3360_v56 = vpop.permute.xlu0 %411 }
 0x259   :  { %1890 = vperm.xlu0 %2402, %v3262_v46  }
 0x25b   :  { %1846 = vperm.xlu1 %2401, %v3286_v37  }
 0x25c   :  { %v3364_v1 = vpop.permute.xlu1 %531  ;;  %v3366_v13 = vpop.permute.xlu0 %491 }
 0x25d   :  { %4110 = vst [vmem:[#allocation47_spill] sm:$0xff] %v3364_v1  ;;  %2405 = vset.pattern.permute.xlu0 %v4111_v53  ;;  %v4140_v1 = vld [vmem:[#allocation40_spill] sm:$0xff] }
 0x25e   :  { %1465 = vperm.xlu0 %2405, %v4100_v42  }
 0x25f   :  { %2403 = vset.pattern.permute.xlu1 %v4112_v21 }
 0x260   :  { %v3371_v32 = vpop.permute.xlu1 %611  ;;  %1581 = vperm.xlu1 %2403, %v4087_v22   ;;  %v3374_v58 = vpop.permute.xlu0 %571 }
 0x261   :  { %4113 = vst [vmem:[#allocation48_spill] sm:$0xff] %v3371_v32  ;;  %4114 = vst [vmem:[#allocation49_spill] sm:$0xff] %v3374_v58  ;;  %v2231_v32 = vld [vmem:[%s4002_s3 + $0x30] sm:$0xf] }
 0x262   :  { %1922 = vperm.xlu0 %2405, %v3273_v57  }
 0x264   :  { %v3377_v2 = vpop.permute.xlu1 %691  ;;  %1589 = vperm.xlu1 %2403, %v4096_v28   ;;  %v3380_v17 = vpop.permute.xlu0 %651 }
 0x265   :  { %4115 = vst [vmem:[#allocation50_spill] sm:$0xff] %v3377_v2  ;;  %4116 = vst [vmem:[#allocation51_spill] sm:$0xff] %v3380_v17 }
 0x266   :  { %2407 = vset.pattern.permute.xlu0 %v4092_v36 }
 0x267   :  { %1505 = vperm.xlu0 %2407, %v4100_v42  }
 0x268   :  { %v3384_v41 = vpop.permute.xlu1 %785  ;;  %1593 = vperm.xlu1 %2403, %v4082_v51   ;;  %v3387_v26 = vpop.permute.xlu0 %825 }
 0x26b   :  { %1958 = vperm.xlu0 %2407, %v3251_v39  }
 0x26c   :  { %v3390_v63 = vpop.permute.xlu1 %865  ;;  %2404 = vset.pattern.permute.xlu1 %v4106_v40  ;;  %v3393_v43 = vpop.permute.xlu0 %905 }
 0x26d   :  { %1882 = vperm.xlu1 %2404, %v3273_v57  }
 0x26f   :  { %1970 = vperm.xlu0 %2407, %v3262_v46  }
 0x270   :  { %v3397_v28 = vpop.permute.xlu1 %945  ;;  %v3399_v23 = vpop.permute.xlu0 %985 }
 0x271   :  { %4117 = vst [vmem:[#allocation52_spill] sm:$0xff] %v3397_v28  ;;  %4118 = vst [vmem:[#allocation53_spill] sm:$0xff] %v3399_v23  ;;  %1886 = vperm.xlu1 %2404, %v3286_v37  }
 0x273   :  { %2409 = vset.pattern.permute.xlu0 %v4107_v7 }
 0x274   :  { %v3403_v62 = vpop.permute.xlu1 %1025  ;;  %1545 = vperm.xlu0 %2409, %v4100_v42   ;;  %v3406_v54 = vpop.permute.xlu0 %1065 }
 0x275   :  { %4119 = vst [vmem:[#allocation54_spill] sm:$0xff] %v3403_v62  ;;  %4120 = vst [vmem:[#allocation55_spill] sm:$0xff] %v3406_v54  ;;  %2406 = vset.pattern.permute.xlu1 %v4111_v53  ;;  %v2421_v62 = vld [vmem:[%s4000_s1 + $0x48] sm:$0x3] }
 0x276   :  { %1918 = vperm.xlu1 %2406, %v3251_v39  }
 0x278   :  { %v3410_v40 = vpop.permute.xlu1 %455  ;;  %2002 = vperm.xlu0 %2409, %v3273_v57   ;;  %v3413_v25 = vpop.permute.xlu0 %415 }
 0x27a   :  { %1926 = vperm.xlu1 %2406, %v3286_v37  }
 0x27c   :  { %v3416_v10 = vpop.permute.xlu1 %535  ;;  %2411 = vset.pattern.permute.xlu0 %v4112_v21  ;;  %v3421_v54 = vpop.permute.xlu0 %495 }
 0x27d   :  { %1585 = vperm.xlu0 %2411, %v4100_v42   ;;  %v4123_v42 = vmov 0  }
 0x27e   :  { %1930 = vperm.xlu1 %2406, %v3262_v46  }
 0x280   :  { %v3425_v53 = vpop.permute.xlu1 %615  ;;  %v3428_v30 = vpop.permute.xlu0 %575 }
 0x281   :  { %2038 = vperm.xlu0 %2411, %v3251_v39   ;;  %4121 = vst [vmem:[#allocation56_spill] sm:$0xff] %v3425_v53 }
 0x282   :  { %2408 = vset.pattern.permute.xlu1 %v4092_v36 }
 0x283   :  { %1962 = vperm.xlu1 %2408, %v3273_v57  }
 0x284   :  { %v3432_v20 = vpop.permute.xlu1 %695  ;;  %v3439_v36 = vpop.permute.xlu0 %655 }
 0x285   :  { %2050 = vperm.xlu0 %2411, %v3262_v46   ;;  %4122 = vst [vmem:[#allocation57_spill] sm:$0xff] %v3432_v20  ;;  %4124 = vst [vmem:[#allocation58_spill] sm:$0xff] %v3439_v36 }
 0x287   :  { %1966 = vperm.xlu1 %2408, %v3286_v37  }
 0x288   :  { %v3442_v27 = vpop.permute.xlu1 %789  ;;  %v3448_v20 = vpop.permute.xlu0 %829 }
 0x289   :  { %2413 = vset.pattern.permute.xlu0 %v4123_v42 }
 0x28a   :  { %361 = vperm.xlu0 %2413, %v2420_v19   ;;  %v2422_v19 = vld [vmem:[%s4000_s1 + $0x18] sm:$0x3] }
 0x28b   :  { %2410 = vset.pattern.permute.xlu1 %v4107_v7 }
 0x28c   :  { %1998 = vperm.xlu1 %2410, %v3251_v39   ;;  %v3454_v7 = vpop.permute.xlu1 %869  ;;  %v3457_v34 = vpop.permute.xlu0 %909 }
 0x28e   :  { %376 = vperm.xlu0 %2413, %v2421_v62  }
 0x290   :  { %2006 = vperm.xlu1 %2410, %v3286_v37   ;;  %v3461_v62 = vpop.permute.xlu1 %949  ;;  %v3465_v16 = vpop.permute.xlu0 %989 }
 0x292   :  { %740 = vperm.xlu0 %2413, %v2422_v19   ;;  %v4125_v19 = vld [vmem:[#allocation28_spill] sm:$0xff] }
 0x293   :  { %v1316_v2 = vmul.f32 %v4125_v19, %v3138_v35  ;;  %4134 = vst [vmem:[#allocation28_spill] sm:$0xff] %v4133_v60 }
 0x294   :  { %2010 = vperm.xlu1 %2410, %v3262_v46  }
 0x296   :  { %1274 = vperm.xlu0 %2413, %v4087_v22   ;;  %v3470_v22 = vpop.permute.xlu1 %1029 }
 0x298   :  { %2412 = vset.pattern.permute.xlu1 %v4112_v21 }
 0x299   :  { %2042 = vperm.xlu1 %2412, %v3273_v57  }
 0x29a   :  { %1289 = vperm.xlu0 %2413, %v4082_v51   ;;  %v4126_v51 = vld [vmem:[#allocation29_spill] sm:$0xff] }
 0x29b   :  { %v1318_v38 = vmul.f32 %v4126_v51, %v3190_v31 }
 0x29d   :  { %2046 = vperm.xlu1 %2412, %v3286_v37  }
 0x29e   :  { %1736 = vperm.xlu0 %2413, %v3273_v57  }
 0x2a1   :  { %2414 = vset.pattern.permute.xlu1 %v4123_v42  ;;  %v3473_v14 = vpop.permute.xlu0 %1758 }
 0x2a2   :  { %1731 = vperm.xlu1 %2414, %v3251_v39   ;;  %1324 = vrot.lane.b32.xlu0 %v1316_v2, %s2471_s16  ;;  %v4127_v2 = vld [vmem:[#allocation39_spill] sm:$0xff] }
 0x2a3   :  { %2415 = vset.pattern.permute.xlu0 %v4112_v21  ;;  %v1317_v19 = vmul.f32 %v4127_v2, %v3039_v33 }
 0x2a5   :  { %v3480_v52 = vpop.permute.xlu1 %1473  ;;  %v3482_v57 = vpop.permute.xlu0 %1770 }
 0x2a6   :  { %1741 = vperm.xlu1 %2414, %v3286_v37   ;;  %1328 = vrot.lane.b32.xlu0 %v1318_v38, %s2471_s16  ;;  %v4128_v37 = vld [vmem:[#allocation30_spill] sm:$0xff] }
 0x2a7   :  { %v1319_v38 = vmul.f32 %v4128_v37, %v3090_v12  ;;  %v2229_v37 = vld [vmem:[%s4002_s3 + $0x20] sm:$0xff] }
 0x2a8   :  { %v2305_v9 = vpack.c.bf16 %v2231_v32, %v2229_v37  ;;  %v730_v32 = vld [vmem:[%s4002_s3 + $0x8] sm:$0xff] }
 0x2aa   :  { %1746 = vperm.xlu1 %2414, %v3262_v46   ;;  %v3487_v42 = vpop.permute.xlu1 %1762  ;;  %v1342_v39 = vpop.permute.xlu0 %1341  ;;  %v4129_v46 = vld [vmem:[#allocation32_spill] sm:$0xff] }
 0x2ab   :  { %v1356_v21 = vmul.f32 %v1342_v39, %v3138_v35  ;;  %v1358_v36 = vmul.f32 %v4129_v46, %v3190_v31  ;;  %v4131_v46 = vld [vmem:[#allocation33_spill] sm:$0xff] }
 0x2ac   :  { %v1396_v23 = vmul.f32 %v4131_v46, %v3138_v35 }
 0x2ad   :  { %1364 = vrot.lane.b32.xlu0 %v1356_v21, %s2472_s17  ;;  %v2232_v21 = vld [vmem:[%s4002_s3 + $0x38] sm:$0xf] }
 0x2ae   :  { %1326 = vrot.lane.b32.xlu1 %v1317_v19, %s2471_s16  ;;  %v3494_v51 = vpop.permute.xlu1 %1766  ;;  %v1354_v17 = vpop.permute.xlu0 %1353  ;;  %v2230_v19 = vld [vmem:[%s4002_s3 + $0x28] sm:$0xff] }
 0x2af   :  { %v2302_v3 = vpack.c.bf16 %v2232_v21, %v2230_v19  ;;  %v4031_v19 = vmov 0.0   ;;  %v4135_v21 = vld [vmem:[#allocation34_spill] sm:$0xff]  ;;  %v1359_v55 = vmul.f32 %v1354_v17, %v3090_v12 }
 0x2b0   :  { %1183 = vmatprep.mubr.f32.mxu1 %v4031_v19  ;;  %v1398_v46 = vmul.f32 %v4135_v21, %v3190_v31  ;;  %v4136_v21 = vld [vmem:[#allocation35_spill] sm:$0xff] }
 0x2b1   :  { %1368 = vrot.lane.b32.xlu0 %v1358_v36, %s2472_s17  ;;  %v4130_v36 = vld [vmem:[#allocation31_spill] sm:$0xff]  ;;  %2304 = vmatprep.subr.msk.bf16.mxu1 %vm3519_vm5, %v2302_v3  ;;  %v732_v3 = vld [vmem:[%s4002_s3 + $0x18] sm:$0xf] }
 0x2b2   :  { %1330 = vrot.lane.b32.xlu1 %v1319_v38, %s2471_s16  ;;  %v3502_v2 = vpop.permute.xlu0 %1798  ;;  %v1357_v38 = vmul.f32 %v4130_v36, %v3039_v33  ;;  %2307 = vmatpush1.bf16.msk.msra.mxu1 %vm3519_vm5, %v2305_v9  ;;  %v2308_v37 = vpack.c.bf16 %v732_v3, %v730_v32  ;;  %v4137_v3 = vld [vmem:[#allocation36_spill] sm:$0xff] }
 0x2b3   :  { %v3504_v39 = vpop.permute.xlu1 %1501 }
 0x2b4   :  { %2310 = vmatprep.subr.msk.bf16.mxu1 %vm3519_vm5, %v2308_v37 }
 0x2b5   :  { %1404 = vrot.lane.b32.xlu0 %v1396_v23, %s2473_s18 }
 0x2b6   :  { %1366 = vrot.lane.b32.xlu1 %v1357_v38, %s2472_s17  ;;  %v3528_v6 = vpop.permute.xlu0 %1810 }
 0x2b7   :  { %v1510_v36 = vpop.permute.xlu1 %1509 }
 0x2b9   :  { %1408 = vrot.lane.b32.xlu0 %v1398_v46, %s2473_s18  ;;  %v1399_v46 = vmul.f32 %v4136_v21, %v3090_v12  ;;  %v4138_v21 = vld [vmem:[#allocation37_spill] sm:$0xff] }
 0x2ba   :  { %1370 = vrot.lane.b32.xlu1 %v1359_v55, %s2472_s17  ;;  %v1438_v28 = vmul.f32 %v4138_v21, %v3190_v31  ;;  %v1478_v21 = vmul.f32 %v4140_v1, %v3190_v31  ;;  %v1516_v1 = vmul.f32 %v3504_v39, %v3138_v35  ;;  %v1776_v39 = vmul.f32 %v3482_v57, %v3090_v12 }
 0x2bb   :  { %v3546_v23 = vpop.permute.xlu1 %1513  ;;  %v1386_v38 = vpop.permute.xlu0 %1385 }
 0x2bc   :  { %v1397_v17 = vmul.f32 %v1386_v38, %v3039_v33  ;;  %v1437_v38 = vmul.f32 %v4137_v3, %v3039_v33 }
 0x2be   :  { %1406 = vrot.lane.b32.xlu1 %v1397_v17, %s2473_s18 }
 0x2bf   :  { %v3552_v9 = vpop.permute.xlu0 %1838 }
 0x2c0   :  { %v3554_v55 = vpop.permute.xlu1 %1802 }
 0x2c2   :  { %1410 = vrot.lane.b32.xlu1 %v1399_v46, %s2473_s18 }
 0x2c3   :  { %v3559_v19 = vpop.permute.xlu0 %1850 }
 0x2c4   :  { %v1807_v32 = vpop.permute.xlu1 %1806 }
 0x2c6   :  { %1446 = vrot.lane.b32.xlu1 %v1437_v38, %s2474_s19 }
 0x2c8   :  { %v1422_v37 = vpop.permute.xlu0 %1421 }
 0x2c9   :  { %v1542_v60 = vpop.permute.xlu1 %1541  ;;  %v1436_v17 = vmul.f32 %v1422_v37, %v3138_v35  ;;  %v1476_v37 = vmul.f32 %v4139_v49, %v3138_v35  ;;  %v1775_v49 = vmul.f32 %v3494_v51, %v3190_v31  ;;  %v1518_v51 = vmul.f32 %v1510_v36, %v3190_v31 }
 0x2ca   :  { %v1556_v57 = vmul.f32 %v1542_v60, %v3138_v35 }
 0x2cb   :  { %1444 = vrot.lane.b32.xlu0 %v1436_v17, %s2474_s19 }
 0x2cc   :  { %v1434_v58 = vpop.permute.xlu0 %1433 }
 0x2cd   :  { %v1550_v53 = vpop.permute.xlu1 %1549  ;;  %v1439_v46 = vmul.f32 %v1434_v58, %v3090_v12 }
 0x2ce   :  { %v1558_v60 = vmul.f32 %v1550_v53, %v3190_v31 }
 0x2cf   :  { %1448 = vrot.lane.b32.xlu0 %v1438_v28, %s2474_s19  ;;  %1450 = vrot.lane.b32.xlu1 %v1439_v46, %s2474_s19  ;;  %v1773_v28 = vmul.f32 %v3473_v14, %v3138_v35  ;;  %v1479_v14 = vmul.f32 %v3480_v52, %v3090_v12  ;;  %v1813_v52 = vmul.f32 %v3502_v2, %v3138_v35 }
 0x2d0   :  { %v3571_v3 = vpop.permute.xlu0 %1069 }
 0x2d1   :  { %v3573_v38 = vpop.permute.xlu1 %1553 }
 0x2d3   :  { %1484 = vrot.lane.b32.xlu0 %v1476_v37, %s2475_s20 }
 0x2d4   :  { %v3578_v17 = vpop.permute.xlu0 %1878 }
 0x2d6   :  { %v3582_v18 = vpop.permute.xlu1 %1842 }
 0x2d7   :  { %1488 = vrot.lane.b32.xlu0 %v1478_v21, %s2475_s20 }
 0x2d8   :  { %v3585_v58 = vpop.permute.xlu0 %1890 }
 0x2da   :  { %v1847_v46 = vpop.permute.xlu1 %1846 }
 0x2db   :  { %1781 = vrot.lane.b32.xlu0 %v1773_v28, %s2471_s16 }
 0x2dd   :  { %v1466_v37 = vpop.permute.xlu0 %1465 }
 0x2de   :  { %v1477_v44 = vmul.f32 %v1466_v37, %v3039_v33 }
 0x2df   :  { %v3593_v24 = vpop.permute.xlu1 %1581  ;;  %1785 = vrot.lane.b32.xlu0 %v1775_v49, %s2471_s16  ;;  %v1774_v49 = vmul.f32 %v3487_v42, %v3039_v33  ;;  %v1815_v42 = vmul.f32 %v1807_v32, %v3190_v31 }
 0x2e0   :  { %1486 = vrot.lane.b32.xlu1 %v1477_v44, %s2475_s20 }
 0x2e1   :  { %v3599_v21 = vpop.permute.xlu0 %1922 }
 0x2e2   :  { %4141 = vst [vmem:[#allocation29_spill] sm:$0xff] %v3599_v21 }
 0x2e3   :  { %v3603_v28 = vpop.permute.xlu1 %1589  ;;  %1524 = vrot.lane.b32.xlu0 %v1516_v1, %s2476_s21 }
 0x2e4   :  { %1490 = vrot.lane.b32.xlu1 %v1479_v14, %s2475_s20 }
 0x2e6   :  { %v1506_v44 = vpop.permute.xlu0 %1505 }
 0x2e7   :  { %v3610_v37 = vpop.permute.xlu1 %1593  ;;  %1528 = vrot.lane.b32.xlu0 %v1518_v51, %s2476_s21  ;;  %v1517_v14 = vmul.f32 %v1506_v44, %v3039_v33  ;;  %v4144_v44 = vld [vmem:[#allocation15_spill] sm:$0xff] }
 0x2e8   :  { %1783 = vrot.lane.b32.xlu1 %v1774_v49, %s2471_s16  ;;  %v1519_v49 = vmul.f32 %v3546_v23, %v3090_v12  ;;  %v1814_v23 = vmul.f32 %v3554_v55, %v3039_v33  ;;  %v4145_v55 = vld [vmem:[#allocation7_spill] sm:$0xff] }
 0x2ea   :  { %v3618_v1 = vpop.permute.xlu0 %1958 }
 0x2eb   :  { %1821 = vrot.lane.b32.xlu0 %v1813_v52, %s2472_s17  ;;  %v4143_v52 = vld [vmem:[#allocation16_spill] sm:$0xff] }
 0x2ec   :  { %v3621_v36 = vpop.permute.xlu1 %1882  ;;  %1787 = vrot.lane.b32.xlu1 %v1776_v39, %s2471_s16  ;;  %v756_v39 = vmul.f32 %v4143_v52, %v3090_v12 }
 0x2ee   :  { %v3626_v51 = vpop.permute.xlu0 %1970 }
 0x2ef   :  { %4142 = vst [vmem:[#allocation39_spill] sm:$0xff] %v3626_v51  ;;  %1825 = vrot.lane.b32.xlu0 %v1815_v42, %s2472_s17  ;;  %v755_v51 = vmul.f32 %v4144_v44, %v3190_v31 }
 0x2f0   :  { %v3629_v2 = vpop.permute.xlu1 %1886  ;;  %1526 = vrot.lane.b32.xlu1 %v1517_v14, %s2476_s21  ;;  %v800_v14 = vadd.f32 %v3332_v8, %v756_v39  ;;  %v1853_v8 = vmul.f32 %v3552_v9, %v3138_v35 }
 0x2f1   :  { %v799_v21 = vadd.f32 %v3442_v27, %v755_v51  ;;  %v1816_v27 = vmul.f32 %v3528_v6, %v3090_v12  ;;  %v380_v51 = vmul.f32 %v4145_v55, %v3039_v33 }
 0x2f3   :  { %1564 = vrot.lane.b32.xlu0 %v1556_v57, %s2477_s22  ;;  %v1546_v32 = vpop.permute.xlu0 %1545  ;;  %v839_v53 = vadd.f32 %v3448_v20, %v799_v21  ;;  %v424_v9 = vadd.f32 %v3226_v4, %v380_v51  ;;  %v1855_v21 = vmul.f32 %v1847_v46, %v3190_v31 }
 0x2f4   :  { %1530 = vrot.lane.b32.xlu1 %v1519_v49, %s2476_s21  ;;  %v840_v49 = vadd.f32 %v3329_v15, %v800_v14  ;;  %v4146_v15 = vld [vmem:[#allocation8_spill] sm:$0xff] }
 0x2f5   :  { %v3641_v42 = vpop.permute.xlu1 %1918  ;;  %v381_v14 = vmul.f32 %v4146_v15, %v3190_v31  ;;  %v879_v6 = vadd.f32 %v3454_v7, %v839_v53  ;;  %v464_v4 = vadd.f32 %v3230_v61, %v424_v9  ;;  %v1596_v7 = vmul.f32 %v3593_v24, %v3138_v35 }
 0x2f6   :  { %v880_v20 = vadd.f32 %v3339_v45, %v840_v49 }
 0x2f7   :  { %1568 = vrot.lane.b32.xlu0 %v1558_v60, %s2477_s22  ;;  %v3649_v57 = vpop.permute.xlu0 %2002  ;;  %v1557_v60 = vmul.f32 %v1546_v32, %v3039_v33  ;;  %v1559_v32 = vmul.f32 %v3573_v38, %v3090_v12 }
 0x2f8   :  { %1823 = vrot.lane.b32.xlu1 %v1814_v23, %s2472_s17  ;;  %v425_v23 = vadd.f32 %v3413_v25, %v381_v14  ;;  %v920_v45 = vadd.f32 %v3337_v48, %v880_v20  ;;  %v919_v25 = vadd.f32 %v3457_v34, %v879_v6  ;;  %v504_v48 = vadd.f32 %v3236_v29, %v464_v4 }
 0x2f9   :  { %v3652_v52 = vpop.permute.xlu1 %1926  ;;  %v1598_v34 = vmul.f32 %v3603_v28, %v3190_v31  ;;  %v1893_v28 = vmul.f32 %v3578_v17, %v3138_v35  ;;  %v1933_v4 = vmul.f32 %v3641_v42, %v3138_v35 }
 0x2fa   :  { %v465_v53 = vadd.f32 %v3410_v40, %v425_v23  ;;  %v960_v24 = vadd.f32 %v3347_v50, %v920_v45  ;;  %v959_v38 = vadd.f32 %v3461_v62, %v919_v25  ;;  %v544_v29 = vadd.f32 %v3240_v11, %v504_v48  ;;  %v4148_v23 = vld [vmem:[#allocation41_spill] sm:$0xff]  ;;  %v4151_v45 = vld [vmem:[#allocation47_spill] sm:$0xff]  ;;  %v4154_v48 = vld [vmem:[#allocation56_spill] sm:$0xff] }
 0x2fb   :  { %1861 = vrot.lane.b32.xlu0 %v1853_v8, %s2473_s18 }
 0x2fc   :  { %1827 = vrot.lane.b32.xlu1 %v1816_v27, %s2472_s17  ;;  %v1586_v39 = vpop.permute.xlu0 %1585  ;;  %v4147_v27 = vld [vmem:[#allocation14_spill] sm:$0xff]  ;;  %v505_v15 = vadd.f32 %v3421_v54, %v465_v53  ;;  %v1000_v50 = vadd.f32 %v3345_v5, %v960_v24  ;;  %v999_v62 = vadd.f32 %v3465_v16, %v959_v38  ;;  %v584_v5 = vadd.f32 %v3246_v0, %v544_v29 }
 0x2fd   :  { %v3664_v44 = vpop.permute.xlu1 %1930  ;;  %v753_v55 = vmul.f32 %v4147_v27, %v3138_v35  ;;  %v4150_v27 = vld [vmem:[#allocation25_spill] sm:$0xff]  ;;  %v4156_v38 = vld [vmem:[#allocation42_spill] sm:$0xff] }
 0x2fe   :  { %v545_v20 = vadd.f32 %v3416_v10, %v505_v15  ;;  %v1040_v16 = vadd.f32 %v3353_v59, %v1000_v50 }
 0x2ff   :  { %1865 = vrot.lane.b32.xlu0 %v1855_v21, %s2473_s18  ;;  %v797_v49 = vadd.f32 %v3384_v41, %v753_v55  ;;  %v1854_v41 = vmul.f32 %v3582_v18, %v3039_v33  ;;  %v1856_v18 = vmul.f32 %v3559_v19, %v3090_v12  ;;  %v1895_v19 = vmul.f32 %v3629_v2, %v3190_v31 }
 0x300   :  { %1566 = vrot.lane.b32.xlu1 %v1557_v60, %s2477_s22  ;;  %v3676_v8 = vpop.permute.xlu0 %2038  ;;  %v1039_v21 = vadd.f32 %v3470_v22, %v999_v62  ;;  %v585_v0 = vadd.f32 %v3428_v30, %v545_v20  ;;  %v1080_v55 = vadd.f32 %v4150_v27, %v1040_v16  ;;  %v1599_v30 = vmul.f32 %v3610_v37, %v3090_v12  ;;  %v3763_v62 = vld [vmem:[#allocation2 + $0x8] sm:$0x3] }
 0x301   :  { %v837_v40 = vadd.f32 %v3387_v26, %v797_v49  ;;  %v4153_v49 = vld [vmem:[#allocation52_spill] sm:$0xff]  ;;  %v4160_v20 = vld [vmem:[#allocation6_spill] sm:$0xff]  ;;  %v1896_v27 = vmul.f32 %v3585_v58, %v3090_v12 }
 0x302   :  { %v3684_v46 = vpop.permute.xlu1 %1962  ;;  %v1079_v59 = vadd.f32 %v3571_v3, %v1039_v21  ;;  %v4152_v3 = vld [vmem:[#allocation9_spill] sm:$0xff]  ;;  %v625_v24 = vadd.f32 %v4154_v48, %v585_v0  ;;  %v1091_v50 = vsel %vm709_vm6, %v1080_v55, 0.0  ;;  %v4165_v0 = vld [vmem:[#allocation43_spill] sm:$0xff]  ;;  %v4168_v55 = vld [vmem:[#allocation50_spill] sm:$0xff] }
 0x303   :  { %1604 = vrot.lane.b32.xlu0 %v1596_v7, %s2478_s23  ;;  %v877_v9 = vadd.f32 %v3390_v63, %v837_v40  ;;  %v1597_v63 = vmul.f32 %v1586_v39, %v3039_v33  ;;  %v4149_v39 = vld [vmem:[#allocation13_spill] sm:$0xff]  ;;  %v4157_v40 = vld [vmem:[#allocation20_spill] sm:$0xff] }
 0x304   :  { %1570 = vrot.lane.b32.xlu1 %v1559_v32, %s2477_s22  ;;  %v3693_v61 = vpop.permute.xlu0 %2050  ;;  %v1090_v42 = vsel %vm707_vm7, %v1079_v59, 0.0 }
 0x305   :  { %v1092_v21 = vadd.f32 %v1091_v50, %v1090_v42  ;;  %v4174_v42 = vld [vmem:[#allocation24_spill] sm:$0xff] }
 0x306   :  { %v3699_v51 = vpop.permute.xlu1 %1966 }
 0x307   :  { %1608 = vrot.lane.b32.xlu0 %v1598_v34, %s2478_s23  ;;  %v4155_v34 = vld [vmem:[#allocation49_spill] sm:$0xff]  ;;  %v1975_v58 = vmul.f32 %v3699_v51, %v3190_v31  ;;  %v4179_v51 = vld [vmem:[#allocation10_spill] sm:$0xff] }
 0x308   :  { %1863 = vrot.lane.b32.xlu1 %v1854_v41, %s2473_s18 }
 0x309   :  { %v362_v14 = vpop.permute.xlu0 %361 }
 0x30a   :  { %v379_v26 = vmul.f32 %v362_v14, %v3138_v35 }
 0x30b   :  { %v3716_v54 = vpop.permute.xlu1 %1998  ;;  %1901 = vrot.lane.b32.xlu0 %v1893_v28, %s2474_s19  ;;  %v1935_v28 = vmul.f32 %v3652_v52, %v3190_v31  ;;  %v4163_v52 = vld [vmem:[#allocation58_spill] sm:$0xff] }
 0x30c   :  { %v423_v11 = vadd.f32 %v3360_v56, %v379_v26  ;;  %1867 = vrot.lane.b32.xlu1 %v1856_v18, %s2473_s18  ;;  %v917_v56 = vadd.f32 %v3393_v43, %v877_v9  ;;  %v1894_v18 = vmul.f32 %v3763_v62, %v3621_v36  ;;  %v4159_v26 = vld [vmem:[#allocation48_spill] sm:$0xff]  ;;  %v4166_v36 = vld [vmem:[#allocation22_spill] sm:$0xff] }
 0x30d   :  { %v377_v17 = vpop.permute.xlu0 %376 }
 0x30e   :  { %v463_v10 = vadd.f32 %v3358_v47, %v423_v11  ;;  %v382_v6 = vmul.f32 %v377_v17, %v3090_v12  ;;  %v624_v47 = vadd.f32 %v4149_v39, %v584_v5  ;;  %v957_v53 = vadd.f32 %v4153_v49, %v917_v56  ;;  %v4161_v5 = vld [vmem:[#allocation18_spill] sm:$0xff] }
 0x30f   :  { %v3731_v60 = vpop.permute.xlu1 %2006  ;;  %1905 = vrot.lane.b32.xlu0 %v1895_v19, %s2474_s19  ;;  %v4162_v19 = vld [vmem:[#allocation53_spill] sm:$0xff]  ;;  %v1973_v39 = vmul.f32 %v3618_v1, %v3138_v35 }
 0x310   :  { %v503_v2 = vadd.f32 %v3366_v13, %v463_v10  ;;  %v426_v22 = vadd.f32 %v4148_v23, %v382_v6  ;;  %1606 = vrot.lane.b32.xlu1 %v1597_v63, %s2478_s23  ;;  %v997_v17 = vadd.f32 %v4162_v19, %v957_v53  ;;  %v665_v10 = vadd.f32 %v4163_v52, %v625_v24  ;;  %v4164_v6 = vld [vmem:[#allocation51_spill] sm:$0xff]  ;;  %v4167_v23 = vld [vmem:[#allocation17_spill] sm:$0xff] }
 0x311   :  { %v741_v43 = vpop.permute.xlu0 %740  ;;  %v4172_v53 = vld [vmem:[#allocation57_spill] sm:$0xff] }
 0x312   :  { %v543_v7 = vadd.f32 %v4151_v45, %v503_v2  ;;  %v466_v25 = vadd.f32 %v4152_v3, %v426_v22  ;;  %v754_v13 = vmul.f32 %v741_v43, %v3039_v33  ;;  %v4158_v33 = vld [vmem:[#allocation11_spill] sm:$0xff]  ;;  %v4169_v43 = vld [vmem:[#allocation44_spill] sm:$0xff]  ;;  %v4170_v45 = vld [vmem:[#allocation21_spill] sm:$0xff]  ;;  %v705_v48 = vadd.f32 %v4172_v53, %v665_v10 }
 0x313   :  { %v3749_v32 = vpop.permute.xlu1 %2010  ;;  %1941 = vrot.lane.b32.xlu0 %v1933_v4, %s2475_s20  ;;  %v664_v29 = vadd.f32 %v4158_v33, %v624_v47  ;;  %v4171_v3 = vld [vmem:[#allocation54_spill] sm:$0xff]  ;;  %v4173_v1 = vld [vmem:[#allocation45_spill] sm:$0xff]  ;;  %v3816_v10 = vld [vmem:[#allocation2 + $0x18] sm:$0x3] }
 0x314   :  { %v583_v37 = vadd.f32 %v4155_v34, %v543_v7  ;;  %v506_v41 = vadd.f32 %v4156_v38, %v466_v25  ;;  %v798_v15 = vadd.f32 %v4157_v40, %v754_v13  ;;  %1610 = vrot.lane.b32.xlu1 %v1599_v30, %s2478_s23  ;;  %v1037_v25 = vadd.f32 %v4171_v3, %v997_v17  ;;  %v4181_v53 = vld [vmem:[#allocation39_spill] sm:$0xff] }
 0x315   :  { %v1275_v14 = vpop.permute.xlu0 %1274  ;;  %v704_v22 = vadd.f32 %v4167_v23, %v664_v29  ;;  %v1093_v13 = vrot.slane %v1092_v21, 4  ;;  %v4177_v29 = vld [vmem:[#allocation23_spill] sm:$0xff]  ;;  %v2013_v17 = vmul.f32 %v3716_v54, %v3138_v35  ;;  %v2053_v3 = vmul.f32 %v3676_v8, %v3138_v35 }
 0x316   :  { %v623_v9 = vadd.f32 %v4159_v26, %v583_v37  ;;  %v546_v11 = vadd.f32 %v4160_v20, %v506_v41  ;;  %v838_v16 = vadd.f32 %v4161_v5, %v798_v15  ;;  %v4175_v41 = vld [vmem:[#allocation29_spill] sm:$0xff]  ;;  %v4176_v15 = vld [vmem:[#allocation46_spill] sm:$0xff]  ;;  %v718_v20 = vsel %vm707_vm7, %v705_v48, 0.0 }
 0x317   :  { %1945 = vrot.lane.b32.xlu0 %v1935_v28, %s2475_s20  ;;  %v710_v38 = vsel %vm709_vm6, %v704_v22, 0.0  ;;  %v1934_v40 = vmul.f32 %v3763_v62, %v4175_v41  ;;  %v4178_v28 = vld [vmem:[#allocation55_spill] sm:$0xff]  ;;  %v1094_v26 = vadd.f32 %v1093_v13, %v1092_v21  ;;  %v1292_v5 = vmul.f32 %v1275_v14, %v3138_v35 }
 0x318   :  { %v3772_v63 = vpop.permute.xlu1 %2042  ;;  %v663_v56 = vadd.f32 %v4164_v6, %v623_v9  ;;  %v586_v59 = vadd.f32 %v4165_v0, %v546_v11  ;;  %v878_v2 = vadd.f32 %v4166_v36, %v838_v16  ;;  %1903 = vrot.lane.b32.xlu1 %v1894_v18, %s2474_s19  ;;  %v1077_v18 = vadd.f32 %v4178_v28, %v1037_v25 }
 0x319   :  { %v3782_v47 = vpop.permute.xlu0 %1289  ;;  %v1936_v6 = vmul.f32 %v3816_v10, %v3664_v44  ;;  %v1095_v14 = vrot.slane %v1094_v26, 2  ;;  %v1976_v48 = vmul.f32 %v3816_v10, %v4181_v53 }
 0x31a   :  { %v703_v4 = vadd.f32 %v4168_v55, %v663_v56  ;;  %v626_v30 = vadd.f32 %v4169_v43, %v586_v59  ;;  %v918_v7 = vadd.f32 %v4170_v45, %v878_v2  ;;  %v4180_v56 = vld [vmem:[#allocation12_spill] sm:$0xff]  ;;  %v1081_v23 = vsel %vm707_vm7, %v1077_v18, 0.0 }
 0x31b   :  { %1981 = vrot.lane.b32.xlu0 %v1973_v39, %s2476_s21  ;;  %v2015_v39 = vmul.f32 %v3731_v60, %v3190_v31  ;;  %v1096_v43 = vadd.f32 %v1095_v14, %v1094_v26  ;;  %v1295_v41 = vmul.f32 %v3816_v10, %v3782_v47  ;;  %v2240_v26 = vld [vmem:[%s4002_s3 + $0x48] sm:$0xff] }
 0x31c   :  { %v2047_v49 = vpop.permute.xlu1 %2046  ;;  %v666_v24 = vadd.f32 %v4173_v1, %v626_v30  ;;  %v958_v34 = vadd.f32 %v4174_v42, %v918_v7  ;;  %1907 = vrot.lane.b32.xlu1 %v1896_v27, %s2474_s19  ;;  %v708_v12 = vsel %vm707_vm7, %v703_v4, 0.0  ;;  %v1974_v4 = vmul.f32 %v3763_v62, %v3684_v46 }
 0x31d   :  { %v3798_v37 = vpop.permute.xlu0 %1736  ;;  %v711_v9 = vadd.f32 %v710_v38, %v708_v12  ;;  %v2055_v12 = vmul.f32 %v2047_v49, %v3190_v31  ;;  %v2014_v38 = vmul.f32 %v3763_v62, %v3649_v57  ;;  %v731_v31 = vld [vmem:[%s4002_s3 + $0x10] sm:$0xf]  ;;  %v4182_v57 = vld [vmem:[#allocation26_spill] sm:$0xff] }
 0x31e   :  { %v706_v33 = vadd.f32 %v4176_v15, %v666_v24  ;;  %v998_v50 = vadd.f32 %v4177_v29, %v958_v34  ;;  %v1097_v24 = vrot.slane %v1096_v43, 1 }
 0x31f   :  { %1985 = vrot.lane.b32.xlu0 %v1975_v58, %s2476_s21  ;;  %v712_v36 = vrot.slane %v711_v9, 4 }
 0x320   :  { %v1038_v11 = vadd.f32 %v4179_v51, %v998_v50  ;;  %1943 = vrot.lane.b32.xlu1 %v1934_v40, %s2475_s20  ;;  %v719_v19 = vsel %vm709_vm6, %v706_v33, 0.0  ;;  %v1098_v15 = vadd.f32 %v1097_v24, %v1096_v43  ;;  %v729_v33 = vld [vmem:[%s4002_s3] sm:$0xff]  ;;  %v1293_v50 = vmul.f32 %v3763_v62, %v4182_v57 }
 0x321   :  { %v3811_v16 = vpop.permute.xlu1 %1731  ;;  %v1325_v52 = vpop.permute.xlu0 %1324  ;;  %v720_v21 = vadd.f32 %v719_v19, %v718_v20  ;;  %v713_v45 = vadd.f32 %v712_v36, %v711_v9  ;;  %v2242_v9 = vld [vmem:[%s4002_s3 + $0x58] sm:$0xf]  ;;  %v2016_v20 = vmul.f32 %v3816_v10, %v3749_v32  ;;  %v2311_v51 = vpack.c.bf16 %v731_v31, %v729_v33 }
 0x322   :  { %v1078_v0 = vadd.f32 %v4180_v56, %v1038_v11  ;;  %v1336_v59 = vadd.f32 %v1325_v52, %v1292_v5  ;;  %v2054_v32 = vmul.f32 %v3763_v62, %v3772_v63  ;;  %v4184_v36 = vmov 0.0   ;;  %v2241_v63 = vld [vmem:[%s4002_s3 + $0x50] sm:$0xf] }
 0x323   :  { %2021 = vrot.lane.b32.xlu0 %v2013_v17, %s2477_s22  ;;  %v721_v2 = vrot.slane %v720_v21, 4  ;;  %v714_v42 = vrot.slane %v713_v45, 2  ;;  %v1100_v17 = vmul.f32 0.999995, %v1098_v15 }
 0x324   :  { %1947 = vrot.lane.b32.xlu1 %v1936_v6, %s2475_s20  ;;  %v1082_v22 = vsel %vm709_vm6, %v1078_v0, 0.0  ;;  %v2314_v6 = vpack.c.bf16 %v2242_v9, %v2240_v26 }
 0x325   :  { %v3824_v54 = vpop.permute.xlu1 %1741  ;;  %v3829_v44 = vpop.permute.xlu0 %1328  ;;  %v1083_v27 = vadd.f32 %v1082_v22, %v1081_v23  ;;  %v722_v55 = vadd.f32 %v721_v2, %v720_v21  ;;  %v715_v49 = vadd.f32 %v714_v42, %v713_v45  ;;  %v2239_v22 = vld [vmem:[%s4002_s3 + $0x40] sm:$0xff] }
 0x326   :  { %v2317_v43 = vpack.c.bf16 %v2241_v63, %v2239_v22  ;;  %v2425_v42 = vld [vmem:[#allocation2] sm:$0xff] }
 0x327   :  { %2025 = vrot.lane.b32.xlu0 %v2015_v39, %s2477_s22  ;;  %v1084_v30 = vrot.slane %v1083_v27, 4  ;;  %v723_v13 = vrot.slane %v722_v55, 2  ;;  %v716_v52 = vrot.slane %v715_v49, 1 }
 0x328   :  { %1983 = vrot.lane.b32.xlu1 %v1974_v4, %s2476_s21 }
 0x329   :  { %v3835_v7 = vpop.permute.xlu1 %1746  ;;  %v1365_v60 = vpop.permute.xlu0 %1364  ;;  %v1085_v25 = vadd.f32 %v1084_v30, %v1083_v27  ;;  %v724_v8 = vadd.f32 %v723_v13, %v722_v55  ;;  %v717_v2 = vadd.f32 %v716_v52, %v715_v49  ;;  %v2056_v55 = vmul.f32 %v3816_v10, %v3693_v61  ;;  %v2249_v61 = vld [vmem:[%s4002_s3 + $0x78] sm:$0xf] }
 0x32a   :  { %v3841_v1 = vadd.f32 %v1365_v60, %v1336_v59  ;;  %v2247_v60 = vld [vmem:[%s4002_s3 + $0x68] sm:$0xff] }
 0x32b   :  { %2061 = vrot.lane.b32.xlu0 %v2053_v3, %s2478_s23  ;;  %v1086_v46 = vrot.slane %v1085_v25, 2  ;;  %v725_v18 = vrot.slane %v724_v8, 1  ;;  %v727_v4 = vmul.f32 0.999995, %v717_v2  ;;  %v2320_v13 = vpack.c.bf16 %v2249_v61, %v2247_v60 }
 0x32c   :  { %1987 = vrot.lane.b32.xlu1 %v1976_v48, %s2476_s21 }
 0x32d   :  { %v1327_v34 = vpop.permute.xlu1 %1326  ;;  %v3846_v58 = vpop.permute.xlu0 %1368  ;;  %v1087_v35 = vadd.f32 %v1086_v46, %v1085_v25  ;;  %v726_v59 = vadd.f32 %v725_v18, %v724_v8 }
 0x32e   :  { %v1337_v11 = vadd.f32 %v1327_v34, %v1293_v50  ;;  %v1749_v34 = vmul.f32 %v2425_v42, %v3811_v16  ;;  %v1752_v16 = vmul.f32 %v3816_v10, %v3835_v7  ;;  %v4185_v7 = vld [vmem:[#allocation27_spill] sm:$0xff] }
 0x32f   :  { %2065 = vrot.lane.b32.xlu0 %v2055_v12, %s2478_s23  ;;  %v1088_v40 = vrot.slane %v1087_v35, 1  ;;  %v728_v27 = vmul.f32 0.999995, %v726_v59 }
 0x330   :  { %2023 = vrot.lane.b32.xlu1 %v2014_v38, %s2477_s22  ;;  %v2426_v38 = vld [vmem:[#allocation2 + $0x10] sm:$0xff] }
 0x331   :  { %v1331_v29 = vpop.permute.xlu1 %1330  ;;  %v1089_v28 = vadd.f32 %v1088_v40, %v1087_v35  ;;  %v3872_v5 = vpop.permute.xlu0 %1404  ;;  %v1192_v3 = vsel %vm1108_vm8, %v728_v27, %v727_v4 }
 0x332   :  { %v3862_v47 = vadd.f32 %v1331_v29, %v1295_v41  ;;  %v1751_v41 = vmul.f32 %v2426_v38, %v3824_v54  ;;  %v1750_v29 = vmul.f32 %v3763_v62, %v3798_v37 }
 0x333   :  { %v1099_v19 = vmul.f32 0.999995, %v1089_v28 }
 0x334   :  { %2027 = vrot.lane.b32.xlu1 %v2016_v20, %s2477_s22 }
 0x335   :  { %v1367_v21 = vpop.permute.xlu1 %1366  ;;  %v1109_v0 = vsel %vm1108_vm8, %v1100_v17, %v1099_v19  ;;  %v1409_v39 = vpop.permute.xlu0 %1408 }
 0x336   :  { %v3875_v56 = vadd.f32 %v1367_v21, %v1337_v11  ;;  %2235 = vmatmul.mubr.msk.f32.vlgmr.msra.gmra.mrb[0].mxu1 %vm707_vm7, %v1109_v0  ;;  %v1294_v21 = vmul.f32 %v2426_v38, %v4185_v7 }
 0x337   :  { %2313 = vmatpush1.bf16.msk.msra.mxu1 %vm3519_vm5, %v2311_v51  ;;  %1265 = vmatprep.mubr.f32.mxu1 %v4184_v36 }
 0x338   :  { %2063 = vrot.lane.b32.xlu1 %v2054_v32, %s2478_s23  ;;  %2316 = vmatprep.subr.msk.bf16.mxu1 %vm3519_vm5, %v2314_v6  ;;  %v1338_v59 = vadd.f32 %v3829_v44, %v1294_v21  ;;  %v1416_v32 = vadd.f32 %v3872_v5, %v3841_v1 }
 0x339   :  { %v3885_v23 = vpop.permute.xlu1 %1370 }
 0x33a   :  { %v1378_v2 = vadd.f32 %v3846_v58, %v1338_v59 }
 0x33c   :  { %2067 = vrot.lane.b32.xlu1 %v2056_v55, %s2478_s23  ;;  %v1418_v4 = vadd.f32 %v1409_v39, %v1378_v2 }
 0x33d   :  { %v1407_v30 = vpop.permute.xlu1 %1406  ;;  %v1445_v45 = vpop.permute.xlu0 %1444 }
 0x33e   :  { %2238 = vmatmul.mubr.msk.f32.vlgmr.msra.gmra.mrb[0].mxu1 %vm707_vm7, %v1192_v3  ;;  %v1417_v22 = vadd.f32 %v1407_v30, %v3875_v56  ;;  %v1456_v63 = vadd.f32 %v1445_v45, %v1416_v32 }
 0x33f   :  { %2319 = vmatpush1.bf16.msk.msra.mxu1 %vm3519_vm5, %v2317_v43  ;;  %1720 = vmatprep.mubr.f32.mxu1 %v4184_v36  ;;  %v1379_v43 = vadd.f32 %v3885_v23, %v3862_v47 }
 0x340   :  { %2322 = vmatprep.subr.msk.bf16.mxu1 %vm3519_vm5, %v2320_v13 }
 0x341   :  { %v1449_v25 = vpop.permute.xlu0 %1448  ;;  %v1411_v53 = vpop.permute.xlu1 %1410 }
 0x342   :  { %v1419_v61 = vadd.f32 %v1411_v53, %v1379_v43  ;;  %v1458_v13 = vadd.f32 %v1449_v25, %v1418_v4  ;;  %v2246_v4 = vld [vmem:[%s4002_s3 + $0x60] sm:$0xff]  ;;  %v2248_v43 = vld [vmem:[%s4002_s3 + $0x70] sm:$0xf]  ;;  %s2481_s3 = smov [#allocation3]  }
 0x343   :  { %s2220_s12 = sshll.u32 %s2481_s3, 4  ;;  %s2221_s12 = int_to_ptr.vmem [resolvable:$true] %s2220_s12 }
 0x344   :  { %s2427_s13 = scalar_lea.vmem %s2221_s12, 32  ;;  %p2432_p1 = scmp.lt.s32.totalorder %s2221_s12, %s2221_s12 }
 0x345   :  { %v1485_v48 = vpop.permute.xlu0 %1484  ;;  %v1447_v46 = vpop.permute.xlu1 %1446  ;;  %p2428_p0 = scmp.ne.s32.totalorder %s2221_s12, %s2427_s13  ;;  %p2433_p2 = scmp.lt.s32.totalorder %s2427_s13, %s2427_s13 }
 0x346   :  { %v1457_v3 = vadd.f32 %v1447_v46, %v1417_v22  ;;  %v1496_v60 = vadd.f32 %v1485_v48, %v1456_v63 }
 0x347   :  { %p2434_p3 = por %p2433_p2, %p2432_p1 }
 0x349   :  { %v1489_v24 = vpop.permute.xlu0 %1488  ;;  %v1451_v35 = vpop.permute.xlu1 %1450  ;;  %p2435_p4 = pnand %p2434_p3, %p2428_p0 }
 0x34a   :  { %v1459_v58 = vadd.f32 %v1451_v35, %v1419_v61  ;;  %v1498_v5 = vadd.f32 %v1489_v24, %v1458_v13 }
 0x34d   :  { %v1782_v12 = vpop.permute.xlu0 %1781 }
 0x34e   :  { %v3912_v8 = vadd.f32 %v1782_v12, %v1749_v34 }
 0x351   :  { %v1786_v40 = vpop.permute.xlu0 %1785 }
 0x352   :  { %v3915_v15 = vadd.f32 %v1786_v40, %v1751_v41  ;;  %v1487_v33 = vpop.permute.xlu1 %1486 }
 0x353   :  { %v1497_v44 = vadd.f32 %v1487_v33, %v1457_v3 }
 0x355   :  { %v1525_v31 = vpop.permute.xlu0 %1524 }
 0x356   :  { %v1491_v49 = vpop.permute.xlu1 %1490  ;;  %v1536_v42 = vadd.f32 %v1525_v31, %v1496_v60 }
 0x357   :  { %v1499_v45 = vadd.f32 %v1491_v49, %v1459_v58 }
 0x359   :  { %v1529_v57 = vpop.permute.xlu0 %1528 }
 0x35a   :  { %v1784_v50 = vpop.permute.xlu1 %1783  ;;  %v1538_v12 = vadd.f32 %v1529_v57, %v1498_v5 }
 0x35b   :  { %v3919_v28 = vadd.f32 %v1784_v50, %v1750_v29 }
 0x35d   :  { %v3923_v18 = vpop.permute.xlu0 %1821 }
 0x35e   :  { %v1788_v26 = vpop.permute.xlu1 %1787 }
 0x35f   :  { %v3925_v54 = vadd.f32 %v1788_v26, %v1752_v16 }
 0x361   :  { %v3927_v9 = vpop.permute.xlu0 %1825 }
 0x362   :  { %v1527_v20 = vpop.permute.xlu1 %1526 }
 0x363   :  { %v1537_v56 = vadd.f32 %v1527_v20, %v1497_v44 }
 0x365   :  { %v1565_v51 = vpop.permute.xlu0 %1564 }
 0x366   :  { %v1531_v11 = vpop.permute.xlu1 %1530  ;;  %v1576_v30 = vadd.f32 %v1565_v51, %v1536_v42  ;;  %v2323_v42 = vpack.c.bf16 %v2248_v43, %v2246_v4 }
 0x367   :  { %v1539_v23 = vadd.f32 %v1531_v11, %v1499_v45 }
 0x369   :  { %v1569_v19 = vpop.permute.xlu0 %1568 }
 0x36a   :  { %v3929_v17 = vpop.permute.xlu1 %1823  ;;  %v1578_v48 = vadd.f32 %v1569_v19, %v1538_v12 }
 0x36b   :  { %v1834_v12 = vadd.f32 %v3929_v17, %v3919_v28 }
 0x36d   :  { %v3931_v62 = vpop.permute.xlu0 %1861 }
 0x36e   :  { %v3933_v37 = vpop.permute.xlu1 %1827 }
 0x371   :  { %v3935_v52 = vpop.permute.xlu0 %1865 }
 0x372   :  { %v1567_v10 = vpop.permute.xlu1 %1566 }
 0x373   :  { %v1577_v39 = vadd.f32 %v1567_v10, %v1537_v56  ;;  %v1833_v56 = vadd.f32 %v3923_v18, %v3912_v8 }
 0x375   :  { %v1605_v6 = vpop.permute.xlu0 %1604 }
 0x376   :  { %v1571_v0 = vpop.permute.xlu1 %1570  ;;  %v1616_v38 = vadd.f32 %v1605_v6, %v1576_v30 }
 0x377   :  { %v1579_v46 = vadd.f32 %v1571_v0, %v1539_v23 }
 0x378   :  { %v1620_v25 = vsel %vm707_vm7, %v1616_v38, 0.0  ;;  %v1835_v38 = vadd.f32 %v3927_v9, %v3915_v15 }
 0x379   :  { %v1609_v27 = vpop.permute.xlu0 %1608 }
 0x37a   :  { %v3943_v55 = vpop.permute.xlu1 %1863  ;;  %v1618_v40 = vadd.f32 %v1609_v27, %v1578_v48  ;;  %v1875_v8 = vadd.f32 %v3935_v52, %v1835_v38 }
 0x37c   :  { %v1629_v49 = vsel %vm707_vm7, %v1618_v40, 0.0 }
 0x37d   :  { %v3947_v34 = vpop.permute.xlu0 %1901 }
 0x37e   :  { %v3949_v1 = vpop.permute.xlu1 %1867 }
 0x381   :  { %v1906_v41 = vpop.permute.xlu0 %1905 }
 0x382   :  { %v1607_v47 = vpop.permute.xlu1 %1606  ;;  %v1915_v17 = vadd.f32 %v1906_v41, %v1875_v8 }
 0x383   :  { %v1617_v53 = vadd.f32 %v1607_v47, %v1577_v39  ;;  %v1873_v39 = vadd.f32 %v3931_v62, %v1833_v56  ;;  %v1874_v47 = vadd.f32 %v3943_v55, %v1834_v12  ;;  %v4186_v56 = vld [vmem:[#allocation19_spill] sm:$0xff] }
 0x385   :  { %v1621_v33 = vsel %vm709_vm6, %v1617_v53, 0.0  ;;  %v1942_v31 = vpop.permute.xlu0 %1941  ;;  %v1913_v14 = vadd.f32 %v3947_v34, %v1873_v39 }
 0x386   :  { %v1622_v35 = vadd.f32 %v1621_v33, %v1620_v25  ;;  %v1611_v24 = vpop.permute.xlu1 %1610 }
 0x387   :  { %v1619_v29 = vadd.f32 %v1611_v24, %v1579_v46  ;;  %v1953_v18 = vadd.f32 %v1942_v31, %v1913_v14 }
 0x388   :  { %v1623_v50 = vrot.slane %v1622_v35, 4 }
 0x389   :  { %v1630_v57 = vsel %vm709_vm6, %v1619_v29, 0.0  ;;  %v1946_v16 = vpop.permute.xlu0 %1945 }
 0x38a   :  { %v1624_v26 = vadd.f32 %v1623_v50, %v1622_v35  ;;  %v1631_v20 = vadd.f32 %v1630_v57, %v1629_v49  ;;  %v1904_v51 = vpop.permute.xlu1 %1903  ;;  %v1955_v15 = vadd.f32 %v1946_v16, %v1915_v17 }
 0x38b   :  { %v1914_v48 = vadd.f32 %v1904_v51, %v1874_v47 }
 0x38c   :  { %v1625_v11 = vrot.slane %v1624_v26, 2  ;;  %v1632_v19 = vrot.slane %v1631_v20, 4 }
 0x38d   :  { %v1982_v10 = vpop.permute.xlu0 %1981 }
 0x38e   :  { %v1626_v7 = vadd.f32 %v1625_v11, %v1624_v26  ;;  %v1633_v21 = vadd.f32 %v1632_v19, %v1631_v20  ;;  %v1908_v6 = vpop.permute.xlu1 %1907  ;;  %v1993_v62 = vadd.f32 %v1982_v10, %v1953_v18 }
 0x390   :  { %v1627_v0 = vrot.slane %v1626_v7, 1  ;;  %v1634_v59 = vrot.slane %v1633_v21, 2 }
 0x391   :  { %v1986_v2 = vpop.permute.xlu0 %1985 }
 0x392   :  { %v1635_v32 = vadd.f32 %v1634_v59, %v1633_v21  ;;  %v1944_v22 = vpop.permute.xlu1 %1943  ;;  %v1628_v63 = vadd.f32 %v1627_v0, %v1626_v7  ;;  %v1995_v34 = vadd.f32 %v1986_v2, %v1955_v15 }
 0x393   :  { %v1954_v25 = vadd.f32 %v1944_v22, %v1914_v48 }
 0x394   :  { %v1636_v27 = vrot.slane %v1635_v32, 1  ;;  %v1638_v61 = vmul.f32 0.999995, %v1628_v63 }
 0x395   :  { %v2022_v44 = vpop.permute.xlu0 %2021 }
 0x396   :  { %v1637_v3 = vadd.f32 %v1636_v27, %v1635_v32  ;;  %v1948_v60 = vpop.permute.xlu1 %1947  ;;  %v2033_v55 = vadd.f32 %v2022_v44, %v1993_v62 }
 0x398   :  { %v1639_v13 = vmul.f32 0.999995, %v1637_v3 }
 0x399   :  { %v2026_v30 = vpop.permute.xlu0 %2025 }
 0x39a   :  { %v1984_v58 = vpop.permute.xlu1 %1983  ;;  %v1647_v5 = vsel %vm1108_vm8, %v1639_v13, %v1638_v61  ;;  %v2035_v52 = vadd.f32 %v2026_v30, %v1995_v34 }
 0x39b   :  { %2245 = vmatmul.mubr.msk.f32.vlgmr.msra.gmra.mrb[0].mxu1 %vm707_vm7, %v1647_v5  ;;  %v1994_v40 = vadd.f32 %v1984_v58, %v1954_v25 }
 0x39c   :  { %2325 = vmatpush1.bf16.msk.msra.mxu1 %vm3519_vm5, %v2323_v42  ;;  %2177 = vmatprep.mubr.f32.mxu1 %v4184_v36  ;;  %v1836_v36 = vadd.f32 %v3933_v37, %v3925_v54 }
 0x39d   :  { %v2062_v53 = vpop.permute.xlu0 %2061 }
 0x39e   :  { %v1988_v45 = vpop.permute.xlu1 %1987  ;;  %v1876_v28 = vadd.f32 %v3949_v1, %v1836_v36  ;;  %v2073_v35 = vadd.f32 %v2062_v53, %v2033_v55 }
 0x3a0   :  { %v1916_v9 = vadd.f32 %v1908_v6, %v1876_v28  ;;  %v2077_v50 = vsel %vm707_vm7, %v2073_v35, 0.0 }
 0x3a1   :  { %v2066_v54 = vpop.permute.xlu0 %2065 }
 0x3a2   :  { %v2024_v23 = vpop.permute.xlu1 %2023  ;;  %v1956_v33 = vadd.f32 %v1948_v60, %v1916_v9  ;;  %v2075_v1 = vadd.f32 %v2066_v54, %v2035_v52 }
 0x3a3   :  { %v2034_v24 = vadd.f32 %v2024_v23, %v1994_v40 }
 0x3a4   :  { %v1996_v31 = vadd.f32 %v1988_v45, %v1956_v33  ;;  %v2086_v51 = vsel %vm707_vm7, %v2075_v1, 0.0 }
 0x3a6   :  { %v2028_v46 = vpop.permute.xlu1 %2027 }
 0x3a7   :  { %v2036_v41 = vadd.f32 %v2028_v46, %v1996_v31 }
 0x3aa   :  { %v2064_v37 = vpop.permute.xlu1 %2063 }
 0x3ab   :  { %v2074_v29 = vadd.f32 %v2064_v37, %v2034_v24 }
 0x3ad   :  { %v2078_v49 = vsel %vm709_vm6, %v2074_v29, 0.0 }
 0x3ae   :  { %v2079_v57 = vadd.f32 %v2078_v49, %v2077_v50  ;;  %v2068_v16 = vpop.permute.xlu1 %2067 }
 0x3af   :  { %v2076_v26 = vadd.f32 %v2068_v16, %v2036_v41 }
 0x3b0   :  { %v2080_v20 = vrot.slane %v2079_v57, 4 }
 0x3b1   :  { %v2087_v11 = vsel %vm709_vm6, %v2076_v26, 0.0 }
 0x3b2   :  { %v2081_v19 = vadd.f32 %v2080_v20, %v2079_v57  ;;  %v2088_v10 = vadd.f32 %v2087_v11, %v2086_v51 }
 0x3b4   :  { %v2082_v7 = vrot.slane %v2081_v19, 2  ;;  %v2089_v21 = vrot.slane %v2088_v10, 4 }
 0x3b6   :  { %v2083_v6 = vadd.f32 %v2082_v7, %v2081_v19  ;;  %v2090_v0 = vadd.f32 %v2089_v21, %v2088_v10 }
 0x3b8   :  { %v2084_v59 = vrot.slane %v2083_v6, 1  ;;  %v2091_v32 = vrot.slane %v2090_v0, 2 }
 0x3ba   :  { %v2092_v2 = vadd.f32 %v2091_v32, %v2090_v0  ;;  %v2085_v22 = vadd.f32 %v2084_v59, %v2083_v6 }
 0x3bc   :  { %v2093_v63 = vrot.slane %v2092_v2, 1  ;;  %v2095_v4 = vmul.f32 0.999995, %v2085_v22 }
 0x3be   :  { %v2094_v27 = vadd.f32 %v2093_v63, %v2092_v2 }
 0x3c0   :  { %v2096_v43 = vmul.f32 0.999995, %v2094_v27 }
 0x3c2   :  { %v2104_v3 = vsel %vm1108_vm8, %v2096_v43, %v2095_v4 }
 0x3c3   :  { %2252 = vmatmul.mubr.msk.f32.vlgmr.msra.gmra.mrb[0].mxu1 %vm707_vm7, %v2104_v3 }
 0x496   :  { %v2179_v60 = vpop.f32.mrb[0].mxu1 }
 0x497   :  { %v2186_v61 = vmul.f32 0.999995, %v2179_v60  ;;  %v2181_v13 = vpop.f32.mrb[1].mxu1 }
 0x498   :  { %v2187_v44 = vmul.f32 0.999995, %v2181_v13 }
 0x499   :  { %2416 = vtanh.f32 %v2186_v61 }
 0x49a   :  { %2418 = vtanh.f32 %v2187_v44 }
 0x4a3   :  { %v2417_v42 = vpop.eup %2416 }
 0x4a4   :  { %v2419_v58 = vpop.eup %2418 }
 0x4a5   :  { %v2253_v5 = vpack.c.bf16 %v2419_v58, %v2417_v42 }
 0x4a7   :  { %v2201_v30 = vrot.slane %v2253_v5, %v4186_v56 }
 0x4a9   :  { %v2208_v45 = vrot.slane %v2201_v30, %v4186_v56 }
 0x4ab   :  { %2213 = vst.msk [vmem:[#allocation3] sm:$0x3] %vm2212_vm11, %v2208_v45 }
 0x4ac   :  { %2438 = shalt.err (!%p2435_p4)
}
 0x4ad   :  { %s2439_s24 = scalar_lea.hbm %s4003_s4, 32 }
 0x4ae   :  { %p2440_p5 = scmp.ne.s32.totalorder %s4003_s4, %s2439_s24  ;;  %p2443_p6 = scmp.lt.u32.totalorder %s2439_s24, %s4003_s4 }
 0x4b0   :  { %p2445_p7 = pnand %p2443_p6, %p2440_p5 }
 0x4b2   :  { %2448 = shalt.err (!%p2445_p7)
}
 0x4b3   :  { %2223 = dma.vmem_to_hbm [thread:$0]  %s2221_s12, 32, %s4003_s4, [#allocation4]  }
 0x4b4   :  { %2449 = dma.done.wait [#allocation4], 32  }
 0x4b5   :  { %2450 = vsyncadd [#allocation4], 4294967264 }
 0x4b6   :  { %2227 = vsyncpa [#allocation4], 1 }

</bundles_post_ra>
